<compile_context>
chip_gen: v5e
topology: v5e:2x2
jax: 0.10.0
libtpu: 0.0.40
codegen_flags: <defaults>
</compile_context>

<pallas_src>
import functools

import jax
import jax.numpy as jnp
from jax import lax
from jax.experimental import pallas as pl
from jax.experimental.pallas import tpu as pltpu


# ---------------------------------------------------------------------------
# small helpers
# ---------------------------------------------------------------------------
def _vmem():
    return pl.BlockSpec(memory_space=pltpu.MemorySpace.VMEM)


def _silu(x):
    # x * sigmoid(x); overflow-free sigmoid, reciprocal on the EUP slot.
    e = jnp.exp(-jnp.abs(x))
    r = pl.reciprocal(1.0 + e, approx=True)
    return x * jnp.where(x >= 0.0, r, e * r)


def _softplus(x):
    # numerically-stable softplus built only from exp/log (safe Mosaic lowering)
    return jnp.maximum(x, 0.0) + jnp.log(1.0 + jnp.exp(-jnp.abs(x)))


# ---------------------------------------------------------------------------
# The single fused kernel
# ---------------------------------------------------------------------------
def _fused_gcn_smamba_kernel(
        # inputs
        x_ref, xmt_ref,
        wa_ref, b1_ref, wfx_ref, wg_ref, bg_ref,
        wemb_ref, bemb_ref,
        win_ref, bin_ref, wxp_ref, bxp_ref, wdt_ref, bdt_ref,
        at_ref, dskip_ref,
        wout_ref, bout_ref, lng_ref, lnb_ref, wproj_ref, bproj_ref,
        # output
        o_ref,
        # scratch
        emb_scr, y_scr,
        *, nbatch, seq_len, n_nodes, n_mark, d_state, d_inner, dt_rank, lpad):
    f32 = jnp.float32
    ltok = n_nodes + n_mark
    d_model = wemb_ref.shape[1]

    # ---- stage 1: constant-folded 2-layer GCN + flatten Linear (all B*T samples) ----
    x2 = x_ref[...].astype(f32).reshape(nbatch * seq_len, n_nodes)          # [B*T, N]
    h1 = jnp.maximum(
        jnp.dot(x2, wa_ref[...], preferred_element_type=f32) + b1_ref[...], 0.0)
    xp = (jnp.dot(x2, wfx_ref[...], preferred_element_type=f32)
          + jnp.dot(h1, wg_ref[...], preferred_element_type=f32)
          + bg_ref[...])                                                     # [B*T, N]

    # ---- stage 2: inverted embedding (variate tokens + mark tokens) ----
    w_emb = wemb_ref[...]                                                    # [T, dm]
    b_emb = bemb_ref[...]                                                    # [1, dm]
    # variate tokens batched across B: one [B*N, T] @ [T, dm] MXU push
    xpT = jnp.concatenate(
        [xp[b * seq_len:(b + 1) * seq_len, :].T for b in range(nbatch)], axis=0)
    ev_all = jnp.dot(xpT, w_emb, preferred_element_type=f32) + b_emb         # [B*N, dm]
    emb_scr[...] = jnp.zeros((nbatch * lpad, d_model), f32)                  # zero pad rows
    for b in range(nbatch):
        emb_scr[b * lpad:b * lpad + n_nodes, :] = \
            ev_all[b * n_nodes:(b + 1) * n_nodes, :]
        em_b = jnp.dot(xmt_ref[b], w_emb, preferred_element_type=f32) + b_emb  # [Mm, dm]
        emb_scr[b * lpad + n_nodes:b * lpad + ltok, :] = em_b
    emb_all = emb_scr[...]                                                   # [B*Lpad, dm]

    # ---- stage 3: Mamba dense preamble (packed in-proj / x-proj, lane-dense) ----
    xz = _silu(jnp.dot(emb_all, win_ref[...], preferred_element_type=f32)
               + bin_ref[...])                                               # [B*Lpad, 2*Din]
    x_act = xz[:, :d_inner]                                                  # silu(x)
    zgate = xz[:, d_inner:]                                                  # silu(z) gate
    dbc = jnp.dot(x_act, wxp_ref[...], preferred_element_type=f32) + bxp_ref[...]
    dt_low = dbc[:, :dt_rank]
    b_seq = dbc[:, dt_rank:dt_rank + d_state]
    c_seq = dbc[:, dt_rank + d_state:]
    delta = _softplus(jnp.dot(dt_low, wdt_ref[...], preferred_element_type=f32)
                      + bdt_ref[...])                                        # [B*Lpad, Din]

    # ---- stage 4: batch-vectorized selective scan ----
    a_t = at_ref[...]                                                        # [Dst, Din]
    dvec = dskip_ref[...]                                                    # [1, Din]
    delta3 = delta.reshape(nbatch, lpad, d_inner)
    u3 = x_act.reshape(nbatch, lpad, d_inner)
    b3 = b_seq.reshape(nbatch, lpad, d_state)
    c3 = c_seq.reshape(nbatch, lpad, d_state)
    du3 = delta3 * u3
    eye_s = (lax.broadcasted_iota(jnp.int32, (d_state, d_state), 0)
             == lax.broadcasted_iota(jnp.int32, (d_state, d_state), 1)).astype(f32)
    # hoisted per-token terms: exp / lane->sublane move sit OFF the serial chain
    dA_ts, x_ts = [], []
    for t in range(ltok):
        dlt = delta3[:, t:t + 1, :]                                          # [B,1,Din]
        b_col = jnp.sum(b3[:, t:t + 1, :] * eye_s, axis=-1, keepdims=True)   # [B,Dst,1]
        dA_ts.append(jnp.exp(dlt * a_t))                                     # [B,Dst,Din]
        x_ts.append(du3[:, t:t + 1, :] * b_col)                              # [B,Dst,Din]
    # serial recurrence: a single FMA per step
    h = jnp.zeros((nbatch, d_state, d_inner), f32)
    h_ts = []
    for t in range(ltok):
        h = dA_ts[t] * h + x_ts[t]
        h_ts.append(h)
    # y only for the first N tokens (projector keeps only variate tokens)
    for t in range(n_nodes):
        y_t = jnp.einsum('bqs,bsd->bqd', c3[:, t:t + 1, :], h_ts[t],
                         preferred_element_type=f32)                         # [B,1,Din]
        y_scr[:, t:t + 1, :] = y_t + dvec * u3[:, t:t + 1, :]

    # ---- stage 5: gate + out-proj + residual + LayerNorm + projector ----
    zg_keep = zgate.reshape(nbatch, lpad, d_inner)[:, :n_nodes, :]           # [B,N,Din]
    yg = (y_scr[...] * zg_keep).reshape(nbatch * n_nodes, d_inner)           # [B*N,Din]
    h_res = (ev_all
             + jnp.dot(yg, wout_ref[...], preferred_element_type=f32)
             + bout_ref[...])                                                # [B*N, dm]
    mu = jnp.mean(h_res, axis=-1, keepdims=True)
    var = jnp.mean((h_res - mu) ** 2, axis=-1, keepdims=True)
    hn = (h_res - mu) / jnp.sqrt(var + 1e-5) * lng_ref[...] + lnb_ref[...]
    w_proj = wproj_ref[...]
    b_proj = bproj_ref[...]
    for b in range(nbatch):
        dec_b = (jnp.dot(hn[b * n_nodes:(b + 1) * n_nodes, :], w_proj,
                         preferred_element_type=f32) + b_proj)               # [N, P]
        o_ref[b] = dec_b.T                                                   # [P, N]


# ---------------------------------------------------------------------------
# Parameter construction (deterministic, synthetic)
# ---------------------------------------------------------------------------
def build_gcn_adjacency(edge_index, num_nodes):
    """Dense GCNConv normalization: A_hat = D^{-1/2} (A + I) D^{-1/2} (PyG convention)."""
    row, col = edge_index[0], edge_index[1]
    loop = jnp.arange(num_nodes, dtype=edge_index.dtype)
    row = jnp.concatenate([row, loop])
    col = jnp.concatenate([col, loop])
    deg = jnp.zeros((num_nodes,), jnp.float32).at[col].add(1.0)
    dinv = jnp.where(deg > 0, deg ** -0.5, 0.0)
    norm = dinv[row] * dinv[col]
    a_hat = jnp.zeros((num_nodes, num_nodes), jnp.float32).at[col, row].add(norm)
    return a_hat                       # aggregation: out = a_hat @ x


def init_params(key, N, T, C, d_model, d_state, d_inner, dt_rank, pred_len, n_mark,
                edge_index):
    ks = jax.random.split(key, 16)
    a_hat = build_gcn_adjacency(edge_index, N)
    eye_n = jnp.eye(N, dtype=jnp.float32)
    eye_c = jnp.eye(C, dtype=jnp.float32)

    # raw GCN weights ([in, out] layout)
    w1 = 0.5 * jax.random.normal(ks[0], (C,), jnp.float32)             # in_channels = 1
    b1 = 0.1 * jax.random.normal(ks[1], (C,), jnp.float32)
    w2 = 0.5 * jax.random.normal(ks[2], (C, C), jnp.float32)
    b2 = 0.1 * jax.random.normal(ks[3], (C,), jnp.float32)

    # flatten_gcn_output: Linear(N*(1+C) -> N), torch layout [out, in], node-major input
    wf_t = 0.1 * jax.random.normal(ks[4], (N, (1 + C) * N), jnp.float32)
    bf = 0.05 * jax.random.normal(ks[5], (N,), jnp.float32)
    wf_in_out = wf_t.T                                                 # [(1+C)*N, N]
    k_idx = jnp.arange((1 + C) * N) // N                               # channel-major -> node-major perm
    n_idx = jnp.arange((1 + C) * N) % N
    wf_perm = wf_in_out[n_idx * (1 + C) + k_idx]
    wfx, wfg = wf_perm[:N], wf_perm[N:]                                # [N,N], [C*N,N]

    # Kron/channel-major expansion (only used transiently for constant folding)
    ahat_t = a_hat.T
    w1e = jnp.kron(w1.reshape(1, C), eye_n)                            # [N, C*N]
    b1e = jnp.repeat(b1, N).reshape(1, C * N)
    w2k = jnp.kron(w2, eye_n)                                          # [C*N, C*N]
    ahatk = jnp.kron(eye_c, ahat_t)                                    # [C*N, C*N]
    b2e = jnp.repeat(b2, N).reshape(1, C * N)

    # constant-fold the GCN weight chain (only the ReLU nonlinearity remains in-kernel)
    w_a = ahat_t @ w1e                                                 # [N, C*N]
    w_g = w2k @ (ahatk @ wfg)                                          # [C*N, N]
    bias_g = b2e @ wfg + bf.reshape(1, N)                              # [1, N]

    # raw Mamba params
    w_emb = 0.1 * jax.random.normal(ks[6], (T, d_model), jnp.float32)
    b_emb = jnp.zeros((1, d_model), jnp.float32)
    w_in = 0.1 * jax.random.normal(ks[7], (d_model, 2 * d_inner), jnp.float32)
    b_in = jnp.zeros((1, 2 * d_inner), jnp.float32)
    w_xproj = 0.1 * jax.random.normal(ks[8], (d_inner, dt_rank + 2 * d_state), jnp.float32)
    b_xproj = jnp.zeros((1, dt_rank + 2 * d_state), jnp.float32)
    w_dt = 0.1 * jax.random.normal(ks[9], (dt_rank, d_inner), jnp.float32)
    b_dt = 0.01 * jnp.ones((1, d_inner), jnp.float32)
    a_log = jnp.log(jnp.broadcast_to(jnp.arange(1, d_state + 1, dtype=jnp.float32),
                                     (d_inner, d_state)))
    d_skip = jnp.ones((1, d_inner), jnp.float32)
    w_out = 0.1 * jax.random.normal(ks[10], (d_inner, d_model), jnp.float32)
    b_out = jnp.zeros((1, d_model), jnp.float32)
    ln_g = jnp.ones((1, d_model), jnp.float32)
    ln_b = jnp.zeros((1, d_model), jnp.float32)
    w_proj = 0.1 * jax.random.normal(ks[11], (d_model, pred_len), jnp.float32)
    b_proj = jnp.zeros((1, pred_len), jnp.float32)

    return dict(
        # folded GCN + flatten Linear (non-transposed domain)
        wa=w_a, b1_row=b1e, wfx=wfx, wg=w_g, bias_row=bias_g,
        # inverted embedding
        w_emb=w_emb, b_emb=b_emb,
        # Mamba dense preamble (packed, lane-dense)
        w_in=w_in, b_in=b_in, w_xproj=w_xproj, b_xproj=b_xproj,
        w_dt=w_dt, b_dt=b_dt,
        # selective scan
        at=(-jnp.exp(a_log)).T,          # A^T, [d_state, d_inner]
        d_skip=d_skip,
        # epilogue
        w_out=w_out, b_out=b_out, ln_g=ln_g, ln_b=ln_b,
        w_proj=w_proj, b_proj=b_proj,
    )


# ---------------------------------------------------------------------------
# Full forward pass: ONE pallas_call, no intermediate HBM traffic
# ---------------------------------------------------------------------------
def model_forward(params, x_enc, x_mark_enc, x_dec, x_mark_dec):
    # TODO(synk): x_dec / x_mark_dec are unused (reference MambaModel unspecified).
    del x_dec, x_mark_dec
    B, T, N = x_enc.shape
    Mm = x_mark_enc.shape[-1]
    ltok = N + Mm
    lpad = ((ltok + 7) // 8) * 8                      # pad token axis to sublane multiple
    d_model = params["w_emb"].shape[1]
    d_inner = params["w_dt"].shape[1]
    dt_rank = params["w_dt"].shape[0]
    d_state = params["at"].shape[0]
    pred_len = params["w_proj"].shape[1]
    f32 = jnp.float32

    # marks pre-arranged variate-major for the token embedding (tiny, fused by XLA)
    xm_t = jnp.transpose(x_mark_enc.astype(f32), (0, 2, 1))           # [B, Mm, T]

    kernel = functools.partial(
        _fused_gcn_smamba_kernel, nbatch=B, seq_len=T, n_nodes=N, n_mark=Mm,
        d_state=d_state, d_inner=d_inner, dt_rank=dt_rank, lpad=lpad)

    return pl.pallas_call(
        kernel,
        out_shape=jax.ShapeDtypeStruct((B, pred_len, N), f32),
        in_specs=[_vmem()] * 23,
        out_specs=_vmem(),
        scratch_shapes=[pltpu.VMEM((B * lpad, d_model), f32),         # padded token embedding
                        pltpu.VMEM((B, N, d_inner), f32)],            # scan output (variate toks)
    )(x_enc.astype(f32), xm_t,
      params["wa"], params["b1_row"], params["wfx"], params["wg"], params["bias_row"],
      params["w_emb"], params["b_emb"],
      params["w_in"], params["b_in"], params["w_xproj"], params["b_xproj"],
      params["w_dt"], params["b_dt"],
      params["at"], params["d_skip"],
      params["w_out"], params["b_out"], params["ln_g"], params["ln_b"],
      params["w_proj"], params["b_proj"])


# ---------------------------------------------------------------------------
if __name__ == "__main__":
    B, T, N = 2, 8, 8                # batch, seq_len, enc_in (graph nodes / variates)
    C = 4                            # gcn_out_channels
    Mm = 3                           # time-mark features
    d_model, d_state, expand, dt_rank, pred_len = 32, 8, 2, 4, 4
    d_inner = expand * d_model       # 64

    # deterministic ring graph (undirected)
    src = jnp.arange(N, dtype=jnp.int32)
    dst = (src + 1) % N
    edge_index = jnp.stack([jnp.concatenate([src, dst]),
                            jnp.concatenate([dst, src])], axis=0)    # [2, 2N]

    key = jax.random.PRNGKey(0)
    k_in, k_par = jax.random.split(key)
    k1, k2, k3, k4 = jax.random.split(k_in, 4)
    x_enc = jax.random.normal(k1, (B, T, N), jnp.float32)
    x_mark_enc = jax.random.normal(k2, (B, T, Mm), jnp.float32)
    x_dec = jax.random.normal(k3, (B, T, N), jnp.float32)
    x_mark_dec = jax.random.normal(k4, (B, T, Mm), jnp.float32)

    params = init_params(k_par, N, T, C, d_model, d_state, d_inner, dt_rank,
                         pred_len, Mm, edge_index)

    fwd = jax.jit(model_forward)
    out = fwd(params, x_enc, x_mark_enc, x_dec, x_mark_dec)
    jax.block_until_ready(out)
    assert out.shape == (B, pred_len, N)
    assert bool(jnp.all(jnp.isfinite(out)))
    print("KERNEL_OK")
</pallas_src>

<mosaic_0001>
module attributes {stable_mosaic.version = 11 : i64} {
  func.func @_fused_gcn_smamba_kernel(%arg0: memref<2x8x8xf32, #tpu.memory_space<vmem>>, %arg1: memref<2x3x8xf32, #tpu.memory_space<vmem>>, %arg2: memref<8x32xf32, #tpu.memory_space<vmem>>, %arg3: memref<1x32xf32, #tpu.memory_space<vmem>>, %arg4: memref<8x8xf32, #tpu.memory_space<vmem>>, %arg5: memref<32x8xf32, #tpu.memory_space<vmem>>, %arg6: memref<1x8xf32, #tpu.memory_space<vmem>>, %arg7: memref<8x32xf32, #tpu.memory_space<vmem>>, %arg8: memref<1x32xf32, #tpu.memory_space<vmem>>, %arg9: memref<32x128xf32, #tpu.memory_space<vmem>>, %arg10: memref<1x128xf32, #tpu.memory_space<vmem>>, %arg11: memref<64x20xf32, #tpu.memory_space<vmem>>, %arg12: memref<1x20xf32, #tpu.memory_space<vmem>>, %arg13: memref<4x64xf32, #tpu.memory_space<vmem>>, %arg14: memref<1x64xf32, #tpu.memory_space<vmem>>, %arg15: memref<8x64xf32, #tpu.memory_space<vmem>>, %arg16: memref<1x64xf32, #tpu.memory_space<vmem>>, %arg17: memref<64x32xf32, #tpu.memory_space<vmem>>, %arg18: memref<1x32xf32, #tpu.memory_space<vmem>>, %arg19: memref<1x32xf32, #tpu.memory_space<vmem>>, %arg20: memref<1x32xf32, #tpu.memory_space<vmem>>, %arg21: memref<32x4xf32, #tpu.memory_space<vmem>>, %arg22: memref<1x4xf32, #tpu.memory_space<vmem>>, %arg23: memref<2x4x8xf32, #tpu.memory_space<vmem>>, %arg24: memref<32x32xf32, #tpu.memory_space<vmem>>, %arg25: memref<2x8x64xf32, #tpu.memory_space<vmem>>) attributes {dimension_semantics = [], scalar_prefetch = 0 : i64, scratch_operands = 2 : i64, tpu.core_type = #tpu.core_type<tc>} {
    %c0 = arith.constant 0 : index
    %c0_0 = arith.constant 0 : index
    %c0_1 = arith.constant 0 : index
    %0 = vector.load %arg0[%c0, %c0_0, %c0_1] : memref<2x8x8xf32, #tpu.memory_space<vmem>>, vector<2x8x8xf32>
    %1 = vector.shape_cast %0 : vector<2x8x8xf32> to vector<16x8xf32>
    %c0_2 = arith.constant 0 : index
    %c0_3 = arith.constant 0 : index
    %2 = vector.load %arg2[%c0_2, %c0_3] : memref<8x32xf32, #tpu.memory_space<vmem>>, vector<8x32xf32>
    %cst = arith.constant dense<0.000000e+00> : vector<16x32xf32>
    %3 = tpu.matmul %1, %2, %cst {dimension_numbers = #tpu.dot_dimension_numbers<[1], [0], [0], [1], [0, 0, 1, 1], [], []>} : vector<16x8xf32>, vector<8x32xf32>, vector<16x32xf32> -> vector<16x32xf32>
    %c0_4 = arith.constant 0 : index
    %c0_5 = arith.constant 0 : index
    %4 = vector.load %arg3[%c0_4, %c0_5] : memref<1x32xf32, #tpu.memory_space<vmem>>, vector<1x32xf32>
    %5 = vector.broadcast %4 : vector<1x32xf32> to vector<16x32xf32>
    %6 = arith.addf %3, %5 : vector<16x32xf32>
    %cst_6 = arith.constant 0.000000e+00 : f32
    %7 = vector.broadcast %cst_6 : f32 to vector<16x32xf32>
    %8 = arith.maximumf %6, %7 : vector<16x32xf32>
    %c0_7 = arith.constant 0 : index
    %c0_8 = arith.constant 0 : index
    %9 = vector.load %arg4[%c0_7, %c0_8] : memref<8x8xf32, #tpu.memory_space<vmem>>, vector<8x8xf32>
    %cst_9 = arith.constant dense<0.000000e+00> : vector<16x8xf32>
    %10 = tpu.matmul %1, %9, %cst_9 {dimension_numbers = #tpu.dot_dimension_numbers<[1], [0], [0], [1], [0, 0, 1, 1], [], []>} : vector<16x8xf32>, vector<8x8xf32>, vector<16x8xf32> -> vector<16x8xf32>
    %c0_10 = arith.constant 0 : index
    %c0_11 = arith.constant 0 : index
    %11 = vector.load %arg5[%c0_10, %c0_11] : memref<32x8xf32, #tpu.memory_space<vmem>>, vector<32x8xf32>
    %cst_12 = arith.constant dense<0.000000e+00> : vector<16x8xf32>
    %12 = tpu.matmul %8, %11, %cst_12 {dimension_numbers = #tpu.dot_dimension_numbers<[1], [0], [0], [1], [0, 0, 1, 1], [], []>} : vector<16x32xf32>, vector<32x8xf32>, vector<16x8xf32> -> vector<16x8xf32>
    %13 = arith.addf %10, %12 : vector<16x8xf32>
    %c0_13 = arith.constant 0 : index
    %c0_14 = arith.constant 0 : index
    %14 = vector.load %arg6[%c0_13, %c0_14] : memref<1x8xf32, #tpu.memory_space<vmem>>, vector<1x8xf32>
    %15 = vector.broadcast %14 : vector<1x8xf32> to vector<16x8xf32>
    %16 = arith.addf %13, %15 : vector<16x8xf32>
    %c0_15 = arith.constant 0 : index
    %c0_16 = arith.constant 0 : index
    %17 = vector.load %arg7[%c0_15, %c0_16] : memref<8x32xf32, #tpu.memory_space<vmem>>, vector<8x32xf32>
    %c0_17 = arith.constant 0 : index
    %c0_18 = arith.constant 0 : index
    %18 = vector.load %arg8[%c0_17, %c0_18] : memref<1x32xf32, #tpu.memory_space<vmem>>, vector<1x32xf32>
    %19 = vector.extract_strided_slice %16 {offsets = [0, 0], sizes = [8, 8], strides = [1, 1]} : vector<16x8xf32> to vector<8x8xf32>
    %20 = tpu.transpose %19, [1, 0] : vector<8x8xf32> -> vector<8x8xf32>
    %21 = vector.extract_strided_slice %16 {offsets = [8, 0], sizes = [8, 8], strides = [1, 1]} : vector<16x8xf32> to vector<8x8xf32>
    %22 = tpu.transpose %21, [1, 0] : vector<8x8xf32> -> vector<8x8xf32>
    %23 = tpu.concatenate %20, %22 in 0 : vector<8x8xf32>, vector<8x8xf32> -> vector<16x8xf32>
    %cst_19 = arith.constant dense<0.000000e+00> : vector<16x32xf32>
    %24 = tpu.matmul %23, %17, %cst_19 {dimension_numbers = #tpu.dot_dimension_numbers<[1], [0], [0], [1], [0, 0, 1, 1], [], []>} : vector<16x8xf32>, vector<8x32xf32>, vector<16x32xf32> -> vector<16x32xf32>
    %25 = vector.broadcast %18 : vector<1x32xf32> to vector<16x32xf32>
    %26 = arith.addf %24, %25 : vector<16x32xf32>
    %cst_20 = arith.constant 0.000000e+00 : f32
    %27 = vector.broadcast %cst_20 : f32 to vector<32x32xf32>
    %c0_21 = arith.constant 0 : index
    %c0_22 = arith.constant 0 : index
    %28 = vector.load %arg24[%c0_21, %c0_22] : memref<32x32xf32, #tpu.memory_space<vmem>>, vector<32x32xf32>
    tpu.vector_store %arg24[%c0_21, %c0_22], %27 {strides = array<i32>} : memref<32x32xf32, #tpu.memory_space<vmem>>, vector<32x32xf32>,
    %29 = vector.extract_strided_slice %26 {offsets = [0, 0], sizes = [8, 32], strides = [1, 1]} : vector<16x32xf32> to vector<8x32xf32>
    %c0_23 = arith.constant 0 : index
    %c0_24 = arith.constant 0 : index
    %30 = vector.load %arg24[%c0_23, %c0_24] : memref<32x32xf32, #tpu.memory_space<vmem>>, vector<8x32xf32>
    tpu.vector_store %arg24[%c0_23, %c0_24], %29 {strides = array<i32>} : memref<32x32xf32, #tpu.memory_space<vmem>>, vector<8x32xf32>,
    %c0_25 = arith.constant 0 : index
    %c0_26 = arith.constant 0 : index
    %c0_27 = arith.constant 0 : index
    %31 = vector.load %arg1[%c0_25, %c0_26, %c0_27] : memref<2x3x8xf32, #tpu.memory_space<vmem>>, vector<1x3x8xf32>
    %32 = vector.shape_cast %31 : vector<1x3x8xf32> to vector<3x8xf32>
    %cst_28 = arith.constant dense<0.000000e+00> : vector<3x32xf32>
    %33 = tpu.matmul %32, %17, %cst_28 {dimension_numbers = #tpu.dot_dimension_numbers<[1], [0], [0], [1], [0, 0, 1, 1], [], []>} : vector<3x8xf32>, vector<8x32xf32>, vector<3x32xf32> -> vector<3x32xf32>
    %34 = vector.broadcast %18 : vector<1x32xf32> to vector<3x32xf32>
    %35 = arith.addf %33, %34 : vector<3x32xf32>
    %c8 = arith.constant 8 : index
    %c0_29 = arith.constant 0 : index
    %36 = vector.load %arg24[%c8, %c0_29] : memref<32x32xf32, #tpu.memory_space<vmem>>, vector<3x32xf32>
    tpu.vector_store %arg24[%c8, %c0_29], %35 {strides = array<i32>} : memref<32x32xf32, #tpu.memory_space<vmem>>, vector<3x32xf32>,
    %37 = vector.extract_strided_slice %26 {offsets = [8, 0], sizes = [8, 32], strides = [1, 1]} : vector<16x32xf32> to vector<8x32xf32>
    %c16 = arith.constant 16 : index
    %c0_30 = arith.constant 0 : index
    %38 = vector.load %arg24[%c16, %c0_30] : memref<32x32xf32, #tpu.memory_space<vmem>>, vector<8x32xf32>
    tpu.vector_store %arg24[%c16, %c0_30], %37 {strides = array<i32>} : memref<32x32xf32, #tpu.memory_space<vmem>>, vector<8x32xf32>,
    %c1 = arith.constant 1 : index
    %c0_31 = arith.constant 0 : index
    %c0_32 = arith.constant 0 : index
    %39 = vector.load %arg1[%c1, %c0_31, %c0_32] : memref<2x3x8xf32, #tpu.memory_space<vmem>>, vector<1x3x8xf32>
    %40 = vector.shape_cast %39 : vector<1x3x8xf32> to vector<3x8xf32>
    %cst_33 = arith.constant dense<0.000000e+00> : vector<3x32xf32>
    %41 = tpu.matmul %40, %17, %cst_33 {dimension_numbers = #tpu.dot_dimension_numbers<[1], [0], [0], [1], [0, 0, 1, 1], [], []>} : vector<3x8xf32>, vector<8x32xf32>, vector<3x32xf32> -> vector<3x32xf32>
    %42 = vector.broadcast %18 : vector<1x32xf32> to vector<3x32xf32>
    %43 = arith.addf %41, %42 : vector<3x32xf32>
    %c24 = arith.constant 24 : index
    %c0_34 = arith.constant 0 : index
    %44 = vector.load %arg24[%c24, %c0_34] : memref<32x32xf32, #tpu.memory_space<vmem>>, vector<3x32xf32>
    tpu.vector_store %arg24[%c24, %c0_34], %43 {strides = array<i32>} : memref<32x32xf32, #tpu.memory_space<vmem>>, vector<3x32xf32>,
    %c0_35 = arith.constant 0 : index
    %c0_36 = arith.constant 0 : index
    %45 = vector.load %arg24[%c0_35, %c0_36] : memref<32x32xf32, #tpu.memory_space<vmem>>, vector<32x32xf32>
    %c0_37 = arith.constant 0 : index
    %c0_38 = arith.constant 0 : index
    %46 = vector.load %arg9[%c0_37, %c0_38] : memref<32x128xf32, #tpu.memory_space<vmem>>, vector<32x128xf32>
    %cst_39 = arith.constant dense<0.000000e+00> : vector<32x128xf32>
    %47 = tpu.matmul %45, %46, %cst_39 {dimension_numbers = #tpu.dot_dimension_numbers<[1], [0], [0], [1], [0, 0, 1, 1], [], []>} : vector<32x32xf32>, vector<32x128xf32>, vector<32x128xf32> -> vector<32x128xf32>
    %c0_40 = arith.constant 0 : index
    %c0_41 = arith.constant 0 : index
    %48 = vector.load %arg10[%c0_40, %c0_41] : memref<1x128xf32, #tpu.memory_space<vmem>>, vector<1x128xf32>
    %49 = vector.broadcast %48 : vector<1x128xf32> to vector<32x128xf32>
    %50 = arith.addf %47, %49 : vector<32x128xf32>
    %51 = math.absf %50 : vector<32x128xf32>
    %cst_42 = arith.constant 0.000000e+00 : f32
    %52 = vector.broadcast %cst_42 : f32 to vector<32x128xf32>
    %53 = arith.subf %52, %51 : vector<32x128xf32>
    %54 = math.exp %53 : vector<32x128xf32>
    %cst_43 = arith.constant 1.000000e+00 : f32
    %55 = vector.broadcast %cst_43 : f32 to vector<32x128xf32>
    %56 = arith.addf %55, %54 : vector<32x128xf32>
    %57 = tpu.reciprocal %56 {approx = true} : vector<32x128xf32> -> vector<32x128xf32>
    %cst_44 = arith.constant 0.000000e+00 : f32
    %58 = vector.broadcast %cst_44 : f32 to vector<32x128xf32>
    %59 = arith.cmpf oge, %50, %58 : vector<32x128xf32>
    %60 = arith.mulf %54, %57 : vector<32x128xf32>
    %61 = arith.select %59, %57, %60 : vector<32x128xi1>, vector<32x128xf32>
    %62 = arith.mulf %50, %61 : vector<32x128xf32>
    %63 = vector.extract_strided_slice %62 {offsets = [0, 0], sizes = [32, 64], strides = [1, 1]} : vector<32x128xf32> to vector<32x64xf32>
    %64 = vector.extract_strided_slice %62 {offsets = [0, 64], sizes = [32, 64], strides = [1, 1]} : vector<32x128xf32> to vector<32x64xf32>
    %c0_45 = arith.constant 0 : index
    %c0_46 = arith.constant 0 : index
    %65 = vector.load %arg11[%c0_45, %c0_46] : memref<64x20xf32, #tpu.memory_space<vmem>>, vector<64x20xf32>
    %cst_47 = arith.constant dense<0.000000e+00> : vector<32x20xf32>
    %66 = tpu.matmul %63, %65, %cst_47 {dimension_numbers = #tpu.dot_dimension_numbers<[1], [0], [0], [1], [0, 0, 1, 1], [], []>} : vector<32x64xf32>, vector<64x20xf32>, vector<32x20xf32> -> vector<32x20xf32>
    %c0_48 = arith.constant 0 : index
    %c0_49 = arith.constant 0 : index
    %67 = vector.load %arg12[%c0_48, %c0_49] : memref<1x20xf32, #tpu.memory_space<vmem>>, vector<1x20xf32>
    %68 = vector.broadcast %67 : vector<1x20xf32> to vector<32x20xf32>
    %69 = arith.addf %66, %68 : vector<32x20xf32>
    %70 = vector.extract_strided_slice %69 {offsets = [0, 0], sizes = [32, 4], strides = [1, 1]} : vector<32x20xf32> to vector<32x4xf32>
    %71 = vector.extract_strided_slice %69 {offsets = [0, 4], sizes = [32, 8], strides = [1, 1]} : vector<32x20xf32> to vector<32x8xf32>
    %72 = vector.extract_strided_slice %69 {offsets = [0, 12], sizes = [32, 8], strides = [1, 1]} : vector<32x20xf32> to vector<32x8xf32>
    %c0_50 = arith.constant 0 : index
    %c0_51 = arith.constant 0 : index
    %73 = vector.load %arg13[%c0_50, %c0_51] : memref<4x64xf32, #tpu.memory_space<vmem>>, vector<4x64xf32>
    %cst_52 = arith.constant dense<0.000000e+00> : vector<32x64xf32>
    %74 = tpu.matmul %70, %73, %cst_52 {dimension_numbers = #tpu.dot_dimension_numbers<[1], [0], [0], [1], [0, 0, 1, 1], [], []>} : vector<32x4xf32>, vector<4x64xf32>, vector<32x64xf32> -> vector<32x64xf32>
    %c0_53 = arith.constant 0 : index
    %c0_54 = arith.constant 0 : index
    %75 = vector.load %arg14[%c0_53, %c0_54] : memref<1x64xf32, #tpu.memory_space<vmem>>, vector<1x64xf32>
    %76 = vector.broadcast %75 : vector<1x64xf32> to vector<32x64xf32>
    %77 = arith.addf %74, %76 : vector<32x64xf32>
    %cst_55 = arith.constant 0.000000e+00 : f32
    %78 = vector.broadcast %cst_55 : f32 to vector<32x64xf32>
    %79 = arith.maximumf %77, %78 : vector<32x64xf32>
    %80 = math.absf %77 : vector<32x64xf32>
    %cst_56 = arith.constant 0.000000e+00 : f32
    %81 = vector.broadcast %cst_56 : f32 to vector<32x64xf32>
    %82 = arith.subf %81, %80 : vector<32x64xf32>
    %83 = math.exp %82 : vector<32x64xf32>
    %cst_57 = arith.constant 1.000000e+00 : f32
    %84 = vector.broadcast %cst_57 : f32 to vector<32x64xf32>
    %85 = arith.addf %84, %83 : vector<32x64xf32>
    %86 = math.log %85 : vector<32x64xf32>
    %87 = arith.addf %79, %86 : vector<32x64xf32>
    %c0_58 = arith.constant 0 : index
    %c0_59 = arith.constant 0 : index
    %88 = vector.load %arg15[%c0_58, %c0_59] : memref<8x64xf32, #tpu.memory_space<vmem>>, vector<8x64xf32>
    %c0_60 = arith.constant 0 : index
    %c0_61 = arith.constant 0 : index
    %89 = vector.load %arg16[%c0_60, %c0_61] : memref<1x64xf32, #tpu.memory_space<vmem>>, vector<1x64xf32>
    %90 = vector.shape_cast %87 : vector<32x64xf32> to vector<2x16x64xf32>
    %91 = vector.shape_cast %63 : vector<32x64xf32> to vector<2x16x64xf32>
    %92 = vector.shape_cast %71 : vector<32x8xf32> to vector<2x16x8xf32>
    %93 = vector.shape_cast %72 : vector<32x8xf32> to vector<2x16x8xf32>
    %94 = arith.mulf %90, %91 : vector<2x16x64xf32>
    %95 = tpu.iota {dimensions = array<i32: 0>} : vector<8x8xi32>
    %96 = tpu.iota {dimensions = array<i32: 1>} : vector<8x8xi32>
    %97 = arith.cmpi eq, %95, %96 : vector<8x8xi32>
    %98 = arith.extui %97 : vector<8x8xi1> to vector<8x8xi32>
    %99 = arith.sitofp %98 : vector<8x8xi32> to vector<8x8xf32>
    %100 = vector.extract_strided_slice %90 {offsets = [0, 0, 0], sizes = [2, 1, 64], strides = [1, 1, 1]} : vector<2x16x64xf32> to vector<2x1x64xf32>
    %101 = vector.extract_strided_slice %92 {offsets = [0, 0, 0], sizes = [2, 1, 8], strides = [1, 1, 1]} : vector<2x16x8xf32> to vector<2x1x8xf32>
    %102 = vector.shape_cast %99 : vector<8x8xf32> to vector<1x8x8xf32>
    %103 = vector.broadcast %101 : vector<2x1x8xf32> to vector<2x8x8xf32>
    %104 = vector.broadcast %102 : vector<1x8x8xf32> to vector<2x8x8xf32>
    %105 = arith.mulf %103, %104 : vector<2x8x8xf32>
    %cst_62 = arith.constant dense<0.000000e+00> : vector<2x8xf32>
    %106 = vector.multi_reduction <add>, %105, %cst_62 [2] : vector<2x8x8xf32> to vector<2x8xf32>
    %107 = vector.shape_cast %106 : vector<2x8xf32> to vector<2x8x1xf32>
    %108 = vector.shape_cast %88 : vector<8x64xf32> to vector<1x8x64xf32>
    %109 = vector.broadcast %100 : vector<2x1x64xf32> to vector<2x8x64xf32>
    %110 = vector.broadcast %108 : vector<1x8x64xf32> to vector<2x8x64xf32>
    %111 = arith.mulf %109, %110 : vector<2x8x64xf32>
    %112 = math.exp %111 : vector<2x8x64xf32>
    %113 = vector.extract_strided_slice %94 {offsets = [0, 0, 0], sizes = [2, 1, 64], strides = [1, 1, 1]} : vector<2x16x64xf32> to vector<2x1x64xf32>
    %114 = vector.broadcast %113 : vector<2x1x64xf32> to vector<2x8x64xf32>
    %115 = vector.broadcast %107 : vector<2x8x1xf32> to vector<2x8x64xf32>
    %116 = arith.mulf %114, %115 : vector<2x8x64xf32>
    %117 = vector.extract_strided_slice %90 {offsets = [0, 1, 0], sizes = [2, 1, 64], strides = [1, 1, 1]} : vector<2x16x64xf32> to vector<2x1x64xf32>
    %118 = vector.extract_strided_slice %92 {offsets = [0, 1, 0], sizes = [2, 1, 8], strides = [1, 1, 1]} : vector<2x16x8xf32> to vector<2x1x8xf32>
    %119 = vector.shape_cast %99 : vector<8x8xf32> to vector<1x8x8xf32>
    %120 = vector.broadcast %118 : vector<2x1x8xf32> to vector<2x8x8xf32>
    %121 = vector.broadcast %119 : vector<1x8x8xf32> to vector<2x8x8xf32>
    %122 = arith.mulf %120, %121 : vector<2x8x8xf32>
    %cst_63 = arith.constant dense<0.000000e+00> : vector<2x8xf32>
    %123 = vector.multi_reduction <add>, %122, %cst_63 [2] : vector<2x8x8xf32> to vector<2x8xf32>
    %124 = vector.shape_cast %123 : vector<2x8xf32> to vector<2x8x1xf32>
    %125 = vector.shape_cast %88 : vector<8x64xf32> to vector<1x8x64xf32>
    %126 = vector.broadcast %117 : vector<2x1x64xf32> to vector<2x8x64xf32>
    %127 = vector.broadcast %125 : vector<1x8x64xf32> to vector<2x8x64xf32>
    %128 = arith.mulf %126, %127 : vector<2x8x64xf32>
    %129 = math.exp %128 : vector<2x8x64xf32>
    %130 = vector.extract_strided_slice %94 {offsets = [0, 1, 0], sizes = [2, 1, 64], strides = [1, 1, 1]} : vector<2x16x64xf32> to vector<2x1x64xf32>
    %131 = vector.broadcast %130 : vector<2x1x64xf32> to vector<2x8x64xf32>
    %132 = vector.broadcast %124 : vector<2x8x1xf32> to vector<2x8x64xf32>
    %133 = arith.mulf %131, %132 : vector<2x8x64xf32>
    %134 = vector.extract_strided_slice %90 {offsets = [0, 2, 0], sizes = [2, 1, 64], strides = [1, 1, 1]} : vector<2x16x64xf32> to vector<2x1x64xf32>
    %135 = vector.extract_strided_slice %92 {offsets = [0, 2, 0], sizes = [2, 1, 8], strides = [1, 1, 1]} : vector<2x16x8xf32> to vector<2x1x8xf32>
    %136 = vector.shape_cast %99 : vector<8x8xf32> to vector<1x8x8xf32>
    %137 = vector.broadcast %135 : vector<2x1x8xf32> to vector<2x8x8xf32>
    %138 = vector.broadcast %136 : vector<1x8x8xf32> to vector<2x8x8xf32>
    %139 = arith.mulf %137, %138 : vector<2x8x8xf32>
    %cst_64 = arith.constant dense<0.000000e+00> : vector<2x8xf32>
    %140 = vector.multi_reduction <add>, %139, %cst_64 [2] : vector<2x8x8xf32> to vector<2x8xf32>
    %141 = vector.shape_cast %140 : vector<2x8xf32> to vector<2x8x1xf32>
    %142 = vector.shape_cast %88 : vector<8x64xf32> to vector<1x8x64xf32>
    %143 = vector.broadcast %134 : vector<2x1x64xf32> to vector<2x8x64xf32>
    %144 = vector.broadcast %142 : vector<1x8x64xf32> to vector<2x8x64xf32>
    %145 = arith.mulf %143, %144 : vector<2x8x64xf32>
    %146 = math.exp %145 : vector<2x8x64xf32>
    %147 = vector.extract_strided_slice %94 {offsets = [0, 2, 0], sizes = [2, 1, 64], strides = [1, 1, 1]} : vector<2x16x64xf32> to vector<2x1x64xf32>
    %148 = vector.broadcast %147 : vector<2x1x64xf32> to vector<2x8x64xf32>
    %149 = vector.broadcast %141 : vector<2x8x1xf32> to vector<2x8x64xf32>
    %150 = arith.mulf %148, %149 : vector<2x8x64xf32>
    %151 = vector.extract_strided_slice %90 {offsets = [0, 3, 0], sizes = [2, 1, 64], strides = [1, 1, 1]} : vector<2x16x64xf32> to vector<2x1x64xf32>
    %152 = vector.extract_strided_slice %92 {offsets = [0, 3, 0], sizes = [2, 1, 8], strides = [1, 1, 1]} : vector<2x16x8xf32> to vector<2x1x8xf32>
    %153 = vector.shape_cast %99 : vector<8x8xf32> to vector<1x8x8xf32>
    %154 = vector.broadcast %152 : vector<2x1x8xf32> to vector<2x8x8xf32>
    %155 = vector.broadcast %153 : vector<1x8x8xf32> to vector<2x8x8xf32>
    %156 = arith.mulf %154, %155 : vector<2x8x8xf32>
    %cst_65 = arith.constant dense<0.000000e+00> : vector<2x8xf32>
    %157 = vector.multi_reduction <add>, %156, %cst_65 [2] : vector<2x8x8xf32> to vector<2x8xf32>
    %158 = vector.shape_cast %157 : vector<2x8xf32> to vector<2x8x1xf32>
    %159 = vector.shape_cast %88 : vector<8x64xf32> to vector<1x8x64xf32>
    %160 = vector.broadcast %151 : vector<2x1x64xf32> to vector<2x8x64xf32>
    %161 = vector.broadcast %159 : vector<1x8x64xf32> to vector<2x8x64xf32>
    %162 = arith.mulf %160, %161 : vector<2x8x64xf32>
    %163 = math.exp %162 : vector<2x8x64xf32>
    %164 = vector.extract_strided_slice %94 {offsets = [0, 3, 0], sizes = [2, 1, 64], strides = [1, 1, 1]} : vector<2x16x64xf32> to vector<2x1x64xf32>
    %165 = vector.broadcast %164 : vector<2x1x64xf32> to vector<2x8x64xf32>
    %166 = vector.broadcast %158 : vector<2x8x1xf32> to vector<2x8x64xf32>
    %167 = arith.mulf %165, %166 : vector<2x8x64xf32>
    %168 = vector.extract_strided_slice %90 {offsets = [0, 4, 0], sizes = [2, 1, 64], strides = [1, 1, 1]} : vector<2x16x64xf32> to vector<2x1x64xf32>
    %169 = vector.extract_strided_slice %92 {offsets = [0, 4, 0], sizes = [2, 1, 8], strides = [1, 1, 1]} : vector<2x16x8xf32> to vector<2x1x8xf32>
    %170 = vector.shape_cast %99 : vector<8x8xf32> to vector<1x8x8xf32>
    %171 = vector.broadcast %169 : vector<2x1x8xf32> to vector<2x8x8xf32>
    %172 = vector.broadcast %170 : vector<1x8x8xf32> to vector<2x8x8xf32>
    %173 = arith.mulf %171, %172 : vector<2x8x8xf32>
    %cst_66 = arith.constant dense<0.000000e+00> : vector<2x8xf32>
    %174 = vector.multi_reduction <add>, %173, %cst_66 [2] : vector<2x8x8xf32> to vector<2x8xf32>
    %175 = vector.shape_cast %174 : vector<2x8xf32> to vector<2x8x1xf32>
    %176 = vector.shape_cast %88 : vector<8x64xf32> to vector<1x8x64xf32>
    %177 = vector.broadcast %168 : vector<2x1x64xf32> to vector<2x8x64xf32>
    %178 = vector.broadcast %176 : vector<1x8x64xf32> to vector<2x8x64xf32>
    %179 = arith.mulf %177, %178 : vector<2x8x64xf32>
    %180 = math.exp %179 : vector<2x8x64xf32>
    %181 = vector.extract_strided_slice %94 {offsets = [0, 4, 0], sizes = [2, 1, 64], strides = [1, 1, 1]} : vector<2x16x64xf32> to vector<2x1x64xf32>
    %182 = vector.broadcast %181 : vector<2x1x64xf32> to vector<2x8x64xf32>
    %183 = vector.broadcast %175 : vector<2x8x1xf32> to vector<2x8x64xf32>
    %184 = arith.mulf %182, %183 : vector<2x8x64xf32>
    %185 = vector.extract_strided_slice %90 {offsets = [0, 5, 0], sizes = [2, 1, 64], strides = [1, 1, 1]} : vector<2x16x64xf32> to vector<2x1x64xf32>
    %186 = vector.extract_strided_slice %92 {offsets = [0, 5, 0], sizes = [2, 1, 8], strides = [1, 1, 1]} : vector<2x16x8xf32> to vector<2x1x8xf32>
    %187 = vector.shape_cast %99 : vector<8x8xf32> to vector<1x8x8xf32>
    %188 = vector.broadcast %186 : vector<2x1x8xf32> to vector<2x8x8xf32>
    %189 = vector.broadcast %187 : vector<1x8x8xf32> to vector<2x8x8xf32>
    %190 = arith.mulf %188, %189 : vector<2x8x8xf32>
    %cst_67 = arith.constant dense<0.000000e+00> : vector<2x8xf32>
    %191 = vector.multi_reduction <add>, %190, %cst_67 [2] : vector<2x8x8xf32> to vector<2x8xf32>
    %192 = vector.shape_cast %191 : vector<2x8xf32> to vector<2x8x1xf32>
    %193 = vector.shape_cast %88 : vector<8x64xf32> to vector<1x8x64xf32>
    %194 = vector.broadcast %185 : vector<2x1x64xf32> to vector<2x8x64xf32>
    %195 = vector.broadcast %193 : vector<1x8x64xf32> to vector<2x8x64xf32>
    %196 = arith.mulf %194, %195 : vector<2x8x64xf32>
    %197 = math.exp %196 : vector<2x8x64xf32>
    %198 = vector.extract_strided_slice %94 {offsets = [0, 5, 0], sizes = [2, 1, 64], strides = [1, 1, 1]} : vector<2x16x64xf32> to vector<2x1x64xf32>
    %199 = vector.broadcast %198 : vector<2x1x64xf32> to vector<2x8x64xf32>
    %200 = vector.broadcast %192 : vector<2x8x1xf32> to vector<2x8x64xf32>
    %201 = arith.mulf %199, %200 : vector<2x8x64xf32>
    %202 = vector.extract_strided_slice %90 {offsets = [0, 6, 0], sizes = [2, 1, 64], strides = [1, 1, 1]} : vector<2x16x64xf32> to vector<2x1x64xf32>
    %203 = vector.extract_strided_slice %92 {offsets = [0, 6, 0], sizes = [2, 1, 8], strides = [1, 1, 1]} : vector<2x16x8xf32> to vector<2x1x8xf32>
    %204 = vector.shape_cast %99 : vector<8x8xf32> to vector<1x8x8xf32>
    %205 = vector.broadcast %203 : vector<2x1x8xf32> to vector<2x8x8xf32>
    %206 = vector.broadcast %204 : vector<1x8x8xf32> to vector<2x8x8xf32>
    %207 = arith.mulf %205, %206 : vector<2x8x8xf32>
    %cst_68 = arith.constant dense<0.000000e+00> : vector<2x8xf32>
    %208 = vector.multi_reduction <add>, %207, %cst_68 [2] : vector<2x8x8xf32> to vector<2x8xf32>
    %209 = vector.shape_cast %208 : vector<2x8xf32> to vector<2x8x1xf32>
    %210 = vector.shape_cast %88 : vector<8x64xf32> to vector<1x8x64xf32>
    %211 = vector.broadcast %202 : vector<2x1x64xf32> to vector<2x8x64xf32>
    %212 = vector.broadcast %210 : vector<1x8x64xf32> to vector<2x8x64xf32>
    %213 = arith.mulf %211, %212 : vector<2x8x64xf32>
    %214 = math.exp %213 : vector<2x8x64xf32>
    %215 = vector.extract_strided_slice %94 {offsets = [0, 6, 0], sizes = [2, 1, 64], strides = [1, 1, 1]} : vector<2x16x64xf32> to vector<2x1x64xf32>
    %216 = vector.broadcast %215 : vector<2x1x64xf32> to vector<2x8x64xf32>
    %217 = vector.broadcast %209 : vector<2x8x1xf32> to vector<2x8x64xf32>
    %218 = arith.mulf %216, %217 : vector<2x8x64xf32>
    %219 = vector.extract_strided_slice %90 {offsets = [0, 7, 0], sizes = [2, 1, 64], strides = [1, 1, 1]} : vector<2x16x64xf32> to vector<2x1x64xf32>
    %220 = vector.extract_strided_slice %92 {offsets = [0, 7, 0], sizes = [2, 1, 8], strides = [1, 1, 1]} : vector<2x16x8xf32> to vector<2x1x8xf32>
    %221 = vector.shape_cast %99 : vector<8x8xf32> to vector<1x8x8xf32>
    %222 = vector.broadcast %220 : vector<2x1x8xf32> to vector<2x8x8xf32>
    %223 = vector.broadcast %221 : vector<1x8x8xf32> to vector<2x8x8xf32>
    %224 = arith.mulf %222, %223 : vector<2x8x8xf32>
    %cst_69 = arith.constant dense<0.000000e+00> : vector<2x8xf32>
    %225 = vector.multi_reduction <add>, %224, %cst_69 [2] : vector<2x8x8xf32> to vector<2x8xf32>
    %226 = vector.shape_cast %225 : vector<2x8xf32> to vector<2x8x1xf32>
    %227 = vector.shape_cast %88 : vector<8x64xf32> to vector<1x8x64xf32>
    %228 = vector.broadcast %219 : vector<2x1x64xf32> to vector<2x8x64xf32>
    %229 = vector.broadcast %227 : vector<1x8x64xf32> to vector<2x8x64xf32>
    %230 = arith.mulf %228, %229 : vector<2x8x64xf32>
    %231 = math.exp %230 : vector<2x8x64xf32>
    %232 = vector.extract_strided_slice %94 {offsets = [0, 7, 0], sizes = [2, 1, 64], strides = [1, 1, 1]} : vector<2x16x64xf32> to vector<2x1x64xf32>
    %233 = vector.broadcast %232 : vector<2x1x64xf32> to vector<2x8x64xf32>
    %234 = vector.broadcast %226 : vector<2x8x1xf32> to vector<2x8x64xf32>
    %235 = arith.mulf %233, %234 : vector<2x8x64xf32>
    %cst_70 = arith.constant 0.000000e+00 : f32
    %236 = vector.broadcast %cst_70 : f32 to vector<2x8x64xf32>
    %237 = arith.mulf %112, %236 : vector<2x8x64xf32>
    %238 = arith.addf %237, %116 : vector<2x8x64xf32>
    %239 = arith.mulf %129, %238 : vector<2x8x64xf32>
    %240 = arith.addf %239, %133 : vector<2x8x64xf32>
    %241 = arith.mulf %146, %240 : vector<2x8x64xf32>
    %242 = arith.addf %241, %150 : vector<2x8x64xf32>
    %243 = arith.mulf %163, %242 : vector<2x8x64xf32>
    %244 = arith.addf %243, %167 : vector<2x8x64xf32>
    %245 = arith.mulf %180, %244 : vector<2x8x64xf32>
    %246 = arith.addf %245, %184 : vector<2x8x64xf32>
    %247 = arith.mulf %197, %246 : vector<2x8x64xf32>
    %248 = arith.addf %247, %201 : vector<2x8x64xf32>
    %249 = arith.mulf %214, %248 : vector<2x8x64xf32>
    %250 = arith.addf %249, %218 : vector<2x8x64xf32>
    %251 = arith.mulf %231, %250 : vector<2x8x64xf32>
    %252 = arith.addf %251, %235 : vector<2x8x64xf32>
    %253 = vector.extract_strided_slice %93 {offsets = [0, 0, 0], sizes = [2, 1, 8], strides = [1, 1, 1]} : vector<2x16x8xf32> to vector<2x1x8xf32>
    "tpu.trace_start"() <{level = 10 : i32, message = "bqs,bsd->bqd"}> : () -> ()
    %cst_71 = arith.constant dense<0.000000e+00> : vector<2x1x64xf32>
    %254 = tpu.matmul %253, %238, %cst_71 {dimension_numbers = #tpu.dot_dimension_numbers<[2], [1], [1], [2], [0, 0, 0, 1, 1, 2], [0], [0]>} : vector<2x1x8xf32>, vector<2x8x64xf32>, vector<2x1x64xf32> -> vector<2x1x64xf32>
    "tpu.trace_stop"() : () -> ()
    %255 = vector.extract_strided_slice %91 {offsets = [0, 0, 0], sizes = [2, 1, 64], strides = [1, 1, 1]} : vector<2x16x64xf32> to vector<2x1x64xf32>
    %256 = vector.shape_cast %89 : vector<1x64xf32> to vector<1x1x64xf32>
    %257 = vector.broadcast %256 : vector<1x1x64xf32> to vector<2x1x64xf32>
    %258 = arith.mulf %257, %255 : vector<2x1x64xf32>
    %259 = arith.addf %254, %258 : vector<2x1x64xf32>
    %c0_72 = arith.constant 0 : index
    %c0_73 = arith.constant 0 : index
    %c0_74 = arith.constant 0 : index
    %260 = vector.load %arg25[%c0_72, %c0_73, %c0_74] : memref<2x8x64xf32, #tpu.memory_space<vmem>>, vector<2x1x64xf32>
    tpu.vector_store %arg25[%c0_72, %c0_73, %c0_74], %259 {strides = array<i32>} : memref<2x8x64xf32, #tpu.memory_space<vmem>>, vector<2x1x64xf32>,
    %261 = vector.extract_strided_slice %93 {offsets = [0, 1, 0], sizes = [2, 1, 8], strides = [1, 1, 1]} : vector<2x16x8xf32> to vector<2x1x8xf32>
    "tpu.trace_start"() <{level = 10 : i32, message = "bqs,bsd->bqd"}> : () -> ()
    %cst_75 = arith.constant dense<0.000000e+00> : vector<2x1x64xf32>
    %262 = tpu.matmul %261, %240, %cst_75 {dimension_numbers = #tpu.dot_dimension_numbers<[2], [1], [1], [2], [0, 0, 0, 1, 1, 2], [0], [0]>} : vector<2x1x8xf32>, vector<2x8x64xf32>, vector<2x1x64xf32> -> vector<2x1x64xf32>
    "tpu.trace_stop"() : () -> ()
    %263 = vector.extract_strided_slice %91 {offsets = [0, 1, 0], sizes = [2, 1, 64], strides = [1, 1, 1]} : vector<2x16x64xf32> to vector<2x1x64xf32>
    %264 = vector.shape_cast %89 : vector<1x64xf32> to vector<1x1x64xf32>
    %265 = vector.broadcast %264 : vector<1x1x64xf32> to vector<2x1x64xf32>
    %266 = arith.mulf %265, %263 : vector<2x1x64xf32>
    %267 = arith.addf %262, %266 : vector<2x1x64xf32>
    %c0_76 = arith.constant 0 : index
    %c1_77 = arith.constant 1 : index
    %c0_78 = arith.constant 0 : index
    %268 = vector.load %arg25[%c0_76, %c1_77, %c0_78] : memref<2x8x64xf32, #tpu.memory_space<vmem>>, vector<2x1x64xf32>
    tpu.vector_store %arg25[%c0_76, %c1_77, %c0_78], %267 {strides = array<i32>} : memref<2x8x64xf32, #tpu.memory_space<vmem>>, vector<2x1x64xf32>,
    %269 = vector.extract_strided_slice %93 {offsets = [0, 2, 0], sizes = [2, 1, 8], strides = [1, 1, 1]} : vector<2x16x8xf32> to vector<2x1x8xf32>
    "tpu.trace_start"() <{level = 10 : i32, message = "bqs,bsd->bqd"}> : () -> ()
    %cst_79 = arith.constant dense<0.000000e+00> : vector<2x1x64xf32>
    %270 = tpu.matmul %269, %242, %cst_79 {dimension_numbers = #tpu.dot_dimension_numbers<[2], [1], [1], [2], [0, 0, 0, 1, 1, 2], [0], [0]>} : vector<2x1x8xf32>, vector<2x8x64xf32>, vector<2x1x64xf32> -> vector<2x1x64xf32>
    "tpu.trace_stop"() : () -> ()
    %271 = vector.extract_strided_slice %91 {offsets = [0, 2, 0], sizes = [2, 1, 64], strides = [1, 1, 1]} : vector<2x16x64xf32> to vector<2x1x64xf32>
    %272 = vector.shape_cast %89 : vector<1x64xf32> to vector<1x1x64xf32>
    %273 = vector.broadcast %272 : vector<1x1x64xf32> to vector<2x1x64xf32>
    %274 = arith.mulf %273, %271 : vector<2x1x64xf32>
    %275 = arith.addf %270, %274 : vector<2x1x64xf32>
    %c0_80 = arith.constant 0 : index
    %c2 = arith.constant 2 : index
    %c0_81 = arith.constant 0 : index
    %276 = vector.load %arg25[%c0_80, %c2, %c0_81] : memref<2x8x64xf32, #tpu.memory_space<vmem>>, vector<2x1x64xf32>
    tpu.vector_store %arg25[%c0_80, %c2, %c0_81], %275 {strides = array<i32>} : memref<2x8x64xf32, #tpu.memory_space<vmem>>, vector<2x1x64xf32>,
    %277 = vector.extract_strided_slice %93 {offsets = [0, 3, 0], sizes = [2, 1, 8], strides = [1, 1, 1]} : vector<2x16x8xf32> to vector<2x1x8xf32>
    "tpu.trace_start"() <{level = 10 : i32, message = "bqs,bsd->bqd"}> : () -> ()
    %cst_82 = arith.constant dense<0.000000e+00> : vector<2x1x64xf32>
    %278 = tpu.matmul %277, %244, %cst_82 {dimension_numbers = #tpu.dot_dimension_numbers<[2], [1], [1], [2], [0, 0, 0, 1, 1, 2], [0], [0]>} : vector<2x1x8xf32>, vector<2x8x64xf32>, vector<2x1x64xf32> -> vector<2x1x64xf32>
    "tpu.trace_stop"() : () -> ()
    %279 = vector.extract_strided_slice %91 {offsets = [0, 3, 0], sizes = [2, 1, 64], strides = [1, 1, 1]} : vector<2x16x64xf32> to vector<2x1x64xf32>
    %280 = vector.shape_cast %89 : vector<1x64xf32> to vector<1x1x64xf32>
    %281 = vector.broadcast %280 : vector<1x1x64xf32> to vector<2x1x64xf32>
    %282 = arith.mulf %281, %279 : vector<2x1x64xf32>
    %283 = arith.addf %278, %282 : vector<2x1x64xf32>
    %c0_83 = arith.constant 0 : index
    %c3 = arith.constant 3 : index
    %c0_84 = arith.constant 0 : index
    %284 = vector.load %arg25[%c0_83, %c3, %c0_84] : memref<2x8x64xf32, #tpu.memory_space<vmem>>, vector<2x1x64xf32>
    tpu.vector_store %arg25[%c0_83, %c3, %c0_84], %283 {strides = array<i32>} : memref<2x8x64xf32, #tpu.memory_space<vmem>>, vector<2x1x64xf32>,
    %285 = vector.extract_strided_slice %93 {offsets = [0, 4, 0], sizes = [2, 1, 8], strides = [1, 1, 1]} : vector<2x16x8xf32> to vector<2x1x8xf32>
    "tpu.trace_start"() <{level = 10 : i32, message = "bqs,bsd->bqd"}> : () -> ()
    %cst_85 = arith.constant dense<0.000000e+00> : vector<2x1x64xf32>
    %286 = tpu.matmul %285, %246, %cst_85 {dimension_numbers = #tpu.dot_dimension_numbers<[2], [1], [1], [2], [0, 0, 0, 1, 1, 2], [0], [0]>} : vector<2x1x8xf32>, vector<2x8x64xf32>, vector<2x1x64xf32> -> vector<2x1x64xf32>
    "tpu.trace_stop"() : () -> ()
    %287 = vector.extract_strided_slice %91 {offsets = [0, 4, 0], sizes = [2, 1, 64], strides = [1, 1, 1]} : vector<2x16x64xf32> to vector<2x1x64xf32>
    %288 = vector.shape_cast %89 : vector<1x64xf32> to vector<1x1x64xf32>
    %289 = vector.broadcast %288 : vector<1x1x64xf32> to vector<2x1x64xf32>
    %290 = arith.mulf %289, %287 : vector<2x1x64xf32>
    %291 = arith.addf %286, %290 : vector<2x1x64xf32>
    %c0_86 = arith.constant 0 : index
    %c4 = arith.constant 4 : index
    %c0_87 = arith.constant 0 : index
    %292 = vector.load %arg25[%c0_86, %c4, %c0_87] : memref<2x8x64xf32, #tpu.memory_space<vmem>>, vector<2x1x64xf32>
    tpu.vector_store %arg25[%c0_86, %c4, %c0_87], %291 {strides = array<i32>} : memref<2x8x64xf32, #tpu.memory_space<vmem>>, vector<2x1x64xf32>,
    %293 = vector.extract_strided_slice %93 {offsets = [0, 5, 0], sizes = [2, 1, 8], strides = [1, 1, 1]} : vector<2x16x8xf32> to vector<2x1x8xf32>
    "tpu.trace_start"() <{level = 10 : i32, message = "bqs,bsd->bqd"}> : () -> ()
    %cst_88 = arith.constant dense<0.000000e+00> : vector<2x1x64xf32>
    %294 = tpu.matmul %293, %248, %cst_88 {dimension_numbers = #tpu.dot_dimension_numbers<[2], [1], [1], [2], [0, 0, 0, 1, 1, 2], [0], [0]>} : vector<2x1x8xf32>, vector<2x8x64xf32>, vector<2x1x64xf32> -> vector<2x1x64xf32>
    "tpu.trace_stop"() : () -> ()
    %295 = vector.extract_strided_slice %91 {offsets = [0, 5, 0], sizes = [2, 1, 64], strides = [1, 1, 1]} : vector<2x16x64xf32> to vector<2x1x64xf32>
    %296 = vector.shape_cast %89 : vector<1x64xf32> to vector<1x1x64xf32>
    %297 = vector.broadcast %296 : vector<1x1x64xf32> to vector<2x1x64xf32>
    %298 = arith.mulf %297, %295 : vector<2x1x64xf32>
    %299 = arith.addf %294, %298 : vector<2x1x64xf32>
    %c0_89 = arith.constant 0 : index
    %c5 = arith.constant 5 : index
    %c0_90 = arith.constant 0 : index
    %300 = vector.load %arg25[%c0_89, %c5, %c0_90] : memref<2x8x64xf32, #tpu.memory_space<vmem>>, vector<2x1x64xf32>
    tpu.vector_store %arg25[%c0_89, %c5, %c0_90], %299 {strides = array<i32>} : memref<2x8x64xf32, #tpu.memory_space<vmem>>, vector<2x1x64xf32>,
    %301 = vector.extract_strided_slice %93 {offsets = [0, 6, 0], sizes = [2, 1, 8], strides = [1, 1, 1]} : vector<2x16x8xf32> to vector<2x1x8xf32>
    "tpu.trace_start"() <{level = 10 : i32, message = "bqs,bsd->bqd"}> : () -> ()
    %cst_91 = arith.constant dense<0.000000e+00> : vector<2x1x64xf32>
    %302 = tpu.matmul %301, %250, %cst_91 {dimension_numbers = #tpu.dot_dimension_numbers<[2], [1], [1], [2], [0, 0, 0, 1, 1, 2], [0], [0]>} : vector<2x1x8xf32>, vector<2x8x64xf32>, vector<2x1x64xf32> -> vector<2x1x64xf32>
    "tpu.trace_stop"() : () -> ()
    %303 = vector.extract_strided_slice %91 {offsets = [0, 6, 0], sizes = [2, 1, 64], strides = [1, 1, 1]} : vector<2x16x64xf32> to vector<2x1x64xf32>
    %304 = vector.shape_cast %89 : vector<1x64xf32> to vector<1x1x64xf32>
    %305 = vector.broadcast %304 : vector<1x1x64xf32> to vector<2x1x64xf32>
    %306 = arith.mulf %305, %303 : vector<2x1x64xf32>
    %307 = arith.addf %302, %306 : vector<2x1x64xf32>
    %c0_92 = arith.constant 0 : index
    %c6 = arith.constant 6 : index
    %c0_93 = arith.constant 0 : index
    %308 = vector.load %arg25[%c0_92, %c6, %c0_93] : memref<2x8x64xf32, #tpu.memory_space<vmem>>, vector<2x1x64xf32>
    tpu.vector_store %arg25[%c0_92, %c6, %c0_93], %307 {strides = array<i32>} : memref<2x8x64xf32, #tpu.memory_space<vmem>>, vector<2x1x64xf32>,
    %309 = vector.extract_strided_slice %93 {offsets = [0, 7, 0], sizes = [2, 1, 8], strides = [1, 1, 1]} : vector<2x16x8xf32> to vector<2x1x8xf32>
    "tpu.trace_start"() <{level = 10 : i32, message = "bqs,bsd->bqd"}> : () -> ()
    %cst_94 = arith.constant dense<0.000000e+00> : vector<2x1x64xf32>
    %310 = tpu.matmul %309, %252, %cst_94 {dimension_numbers = #tpu.dot_dimension_numbers<[2], [1], [1], [2], [0, 0, 0, 1, 1, 2], [0], [0]>} : vector<2x1x8xf32>, vector<2x8x64xf32>, vector<2x1x64xf32> -> vector<2x1x64xf32>
    "tpu.trace_stop"() : () -> ()
    %311 = vector.extract_strided_slice %91 {offsets = [0, 7, 0], sizes = [2, 1, 64], strides = [1, 1, 1]} : vector<2x16x64xf32> to vector<2x1x64xf32>
    %312 = vector.shape_cast %89 : vector<1x64xf32> to vector<1x1x64xf32>
    %313 = vector.broadcast %312 : vector<1x1x64xf32> to vector<2x1x64xf32>
    %314 = arith.mulf %313, %311 : vector<2x1x64xf32>
    %315 = arith.addf %310, %314 : vector<2x1x64xf32>
    %c0_95 = arith.constant 0 : index
    %c7 = arith.constant 7 : index
    %c0_96 = arith.constant 0 : index
    %316 = vector.load %arg25[%c0_95, %c7, %c0_96] : memref<2x8x64xf32, #tpu.memory_space<vmem>>, vector<2x1x64xf32>
    tpu.vector_store %arg25[%c0_95, %c7, %c0_96], %315 {strides = array<i32>} : memref<2x8x64xf32, #tpu.memory_space<vmem>>, vector<2x1x64xf32>,
    %317 = vector.shape_cast %64 : vector<32x64xf32> to vector<2x16x64xf32>
    %318 = vector.extract_strided_slice %317 {offsets = [0, 0, 0], sizes = [2, 8, 64], strides = [1, 1, 1]} : vector<2x16x64xf32> to vector<2x8x64xf32>
    %c0_97 = arith.constant 0 : index
    %c0_98 = arith.constant 0 : index
    %c0_99 = arith.constant 0 : index
    %319 = vector.load %arg25[%c0_97, %c0_98, %c0_99] : memref<2x8x64xf32, #tpu.memory_space<vmem>>, vector<2x8x64xf32>
    %320 = arith.mulf %319, %318 : vector<2x8x64xf32>
    %321 = vector.shape_cast %320 : vector<2x8x64xf32> to vector<16x64xf32>
    %c0_100 = arith.constant 0 : index
    %c0_101 = arith.constant 0 : index
    %322 = vector.load %arg17[%c0_100, %c0_101] : memref<64x32xf32, #tpu.memory_space<vmem>>, vector<64x32xf32>
    %cst_102 = arith.constant dense<0.000000e+00> : vector<16x32xf32>
    %323 = tpu.matmul %321, %322, %cst_102 {dimension_numbers = #tpu.dot_dimension_numbers<[1], [0], [0], [1], [0, 0, 1, 1], [], []>} : vector<16x64xf32>, vector<64x32xf32>, vector<16x32xf32> -> vector<16x32xf32>
    %324 = arith.addf %26, %323 : vector<16x32xf32>
    %c0_103 = arith.constant 0 : index
    %c0_104 = arith.constant 0 : index
    %325 = vector.load %arg18[%c0_103, %c0_104] : memref<1x32xf32, #tpu.memory_space<vmem>>, vector<1x32xf32>
    %326 = vector.broadcast %325 : vector<1x32xf32> to vector<16x32xf32>
    %327 = arith.addf %324, %326 : vector<16x32xf32>
    %cst_105 = arith.constant dense<0.000000e+00> : vector<16xf32>
    %328 = vector.multi_reduction <add>, %327, %cst_105 [1] : vector<16x32xf32> to vector<16xf32>
    %329 = vector.shape_cast %328 : vector<16xf32> to vector<16x1xf32>
    %cst_106 = arith.constant 3.200000e+01 : f32
    %330 = vector.broadcast %cst_106 : f32 to vector<16x1xf32>
    %331 = arith.divf %329, %330 : vector<16x1xf32>
    %332 = vector.broadcast %331 : vector<16x1xf32> to vector<16x32xf32>
    %333 = arith.subf %327, %332 : vector<16x32xf32>
    %334 = arith.mulf %333, %333 : vector<16x32xf32>
    %cst_107 = arith.constant dense<0.000000e+00> : vector<16xf32>
    %335 = vector.multi_reduction <add>, %334, %cst_107 [1] : vector<16x32xf32> to vector<16xf32>
    %336 = vector.shape_cast %335 : vector<16xf32> to vector<16x1xf32>
    %cst_108 = arith.constant 3.200000e+01 : f32
    %337 = vector.broadcast %cst_108 : f32 to vector<16x1xf32>
    %338 = arith.divf %336, %337 : vector<16x1xf32>
    %339 = vector.broadcast %331 : vector<16x1xf32> to vector<16x32xf32>
    %340 = arith.subf %327, %339 : vector<16x32xf32>
    %cst_109 = arith.constant 9.99999974E-6 : f32
    %341 = vector.broadcast %cst_109 : f32 to vector<16x1xf32>
    %342 = arith.addf %338, %341 : vector<16x1xf32>
    %343 = math.sqrt %342 : vector<16x1xf32>
    %344 = vector.broadcast %343 : vector<16x1xf32> to vector<16x32xf32>
    %345 = arith.divf %340, %344 : vector<16x32xf32>
    %c0_110 = arith.constant 0 : index
    %c0_111 = arith.constant 0 : index
    %346 = vector.load %arg19[%c0_110, %c0_111] : memref<1x32xf32, #tpu.memory_space<vmem>>, vector<1x32xf32>
    %347 = vector.broadcast %346 : vector<1x32xf32> to vector<16x32xf32>
    %348 = arith.mulf %345, %347 : vector<16x32xf32>
    %c0_112 = arith.constant 0 : index
    %c0_113 = arith.constant 0 : index
    %349 = vector.load %arg20[%c0_112, %c0_113] : memref<1x32xf32, #tpu.memory_space<vmem>>, vector<1x32xf32>
    %350 = vector.broadcast %349 : vector<1x32xf32> to vector<16x32xf32>
    %351 = arith.addf %348, %350 : vector<16x32xf32>
    %c0_114 = arith.constant 0 : index
    %c0_115 = arith.constant 0 : index
    %352 = vector.load %arg21[%c0_114, %c0_115] : memref<32x4xf32, #tpu.memory_space<vmem>>, vector<32x4xf32>
    %c0_116 = arith.constant 0 : index
    %c0_117 = arith.constant 0 : index
    %353 = vector.load %arg22[%c0_116, %c0_117] : memref<1x4xf32, #tpu.memory_space<vmem>>, vector<1x4xf32>
    %354 = vector.extract_strided_slice %351 {offsets = [0, 0], sizes = [8, 32], strides = [1, 1]} : vector<16x32xf32> to vector<8x32xf32>
    %cst_118 = arith.constant dense<0.000000e+00> : vector<8x4xf32>
    %355 = tpu.matmul %354, %352, %cst_118 {dimension_numbers = #tpu.dot_dimension_numbers<[1], [0], [0], [1], [0, 0, 1, 1], [], []>} : vector<8x32xf32>, vector<32x4xf32>, vector<8x4xf32> -> vector<8x4xf32>
    %356 = vector.broadcast %353 : vector<1x4xf32> to vector<8x4xf32>
    %357 = arith.addf %355, %356 : vector<8x4xf32>
    %358 = tpu.transpose %357, [1, 0] : vector<8x4xf32> -> vector<4x8xf32>
    %c0_119 = arith.constant 0 : index
    %c0_120 = arith.constant 0 : index
    %c0_121 = arith.constant 0 : index
    %359 = vector.load %arg23[%c0_119, %c0_120, %c0_121] : memref<2x4x8xf32, #tpu.memory_space<vmem>>, vector<1x4x8xf32>
    %360 = vector.shape_cast %359 : vector<1x4x8xf32> to vector<4x8xf32>
    %361 = vector.shape_cast %358 : vector<4x8xf32> to vector<1x4x8xf32>
    tpu.vector_store %arg23[%c0_119, %c0_120, %c0_121], %361 {strides = array<i32>} : memref<2x4x8xf32, #tpu.memory_space<vmem>>, vector<1x4x8xf32>,
    %362 = vector.extract_strided_slice %351 {offsets = [8, 0], sizes = [8, 32], strides = [1, 1]} : vector<16x32xf32> to vector<8x32xf32>
    %cst_122 = arith.constant dense<0.000000e+00> : vector<8x4xf32>
    %363 = tpu.matmul %362, %352, %cst_122 {dimension_numbers = #tpu.dot_dimension_numbers<[1], [0], [0], [1], [0, 0, 1, 1], [], []>} : vector<8x32xf32>, vector<32x4xf32>, vector<8x4xf32> -> vector<8x4xf32>
    %364 = vector.broadcast %353 : vector<1x4xf32> to vector<8x4xf32>
    %365 = arith.addf %363, %364 : vector<8x4xf32>
    %366 = tpu.transpose %365, [1, 0] : vector<8x4xf32> -> vector<4x8xf32>
    %c1_123 = arith.constant 1 : index
    %c0_124 = arith.constant 0 : index
    %c0_125 = arith.constant 0 : index
    %367 = vector.load %arg23[%c1_123, %c0_124, %c0_125] : memref<2x4x8xf32, #tpu.memory_space<vmem>>, vector<1x4x8xf32>
    %368 = vector.shape_cast %367 : vector<1x4x8xf32> to vector<4x8xf32>
    %369 = vector.shape_cast %366 : vector<4x8xf32> to vector<1x4x8xf32>
    tpu.vector_store %arg23[%c1_123, %c0_124, %c0_125], %369 {strides = array<i32>} : memref<2x4x8xf32, #tpu.memory_space<vmem>>, vector<1x4x8xf32>,
    return
  }
}

</mosaic_0001>

<bundles_post_ra>
// kernel: model_forward.1
= control target key start
LH: loop header
LB: loop body
LE: loop exit
PB: predicated region body
PF: predicated region fallthrough
CT: control target
= control target key end

     0   :  { %s2437_s0 = inlined_call_operand.vmem [shape: f32[2,8,8], index: 0, kind: input, shape index: {}]   ;;  %s2438_s1 = inlined_call_operand.vmem [shape: f32[2,3,8], index: 1, kind: input, shape index: {}]   ;;  %s2439_s2 = inlined_call_operand.vmem [shape: f32[8,32], index: 2, kind: input, shape index: {}]   ;;  %s2440_s3 = inlined_call_operand.vmem [shape: f32[1,32], index: 3, kind: input, shape index: {}]   ;;  %s2441_s4 = inlined_call_operand.vmem [shape: f32[8,8], index: 4, kind: input, shape index: {}]   ;;  %s2442_s5 = inlined_call_operand.vmem [shape: f32[32,8], index: 5, kind: input, shape index: {}]   ;;  %s2443_s6 = inlined_call_operand.vmem [shape: f32[1,8], index: 6, kind: input, shape index: {}]   ;;  %s2444_s7 = inlined_call_operand.vmem [shape: f32[8,32], index: 7, kind: input, shape index: {}]   ;;  %s2445_s8 = inlined_call_operand.vmem [shape: f32[1,32], index: 8, kind: input, shape index: {}]   ;;  %s2446_s9 = inlined_call_operand.vmem [shape: f32[32,128], index: 9, kind: input, shape index: {}]   ;;  %s2447_s10 = inlined_call_operand.vmem [shape: f32[1,128], index: 10, kind: input, shape index: {}]   ;;  %s2448_s11 = inlined_call_operand.vmem [shape: f32[64,20], index: 11, kind: input, shape index: {}]   ;;  %s2449_s12 = inlined_call_operand.vmem [shape: f32[1,20], index: 12, kind: input, shape index: {}]   ;;  %s2450_s13 = inlined_call_operand.vmem [shape: f32[4,64], index: 13, kind: input, shape index: {}]   ;;  %s2451_s14 = inlined_call_operand.vmem [shape: f32[1,64], index: 14, kind: input, shape index: {}]   ;;  %s2452_s15 = inlined_call_operand.vmem [shape: f32[8,64], index: 15, kind: input, shape index: {}]   ;;  %s2453_s16 = inlined_call_operand.vmem [shape: f32[1,64], index: 16, kind: input, shape index: {}]   ;;  %s2454_s17 = inlined_call_operand.vmem [shape: f32[64,32], index: 17, kind: input, shape index: {}]   ;;  %s2455_s18 = inlined_call_operand.vmem [shape: f32[1,32], index: 18, kind: input, shape index: {}]   ;;  %s2456_s19 = inlined_call_operand.vmem [shape: f32[1,32], index: 19, kind: input, shape index: {}]   ;;  %s2457_s20 = inlined_call_operand.vmem [shape: f32[1,32], index: 20, kind: input, shape index: {}]   ;;  %s2458_s21 = inlined_call_operand.vmem [shape: f32[32,4], index: 21, kind: input, shape index: {}]   ;;  %s2459_s22 = inlined_call_operand.vmem [shape: f32[1,4], index: 22, kind: input, shape index: {}]   ;;  %s2460_s23 = inlined_call_operand.hbm [shape: f32[2,4,8], index: 23, kind: output, shape index: {}]  }
   0x1   :  { %2464 = sst [smem:[#allocation7_spill]] %s2437_s0 }
   0x2   :  { %2465 = sst [smem:[#allocation8_spill]] %s2438_s1 }
   0x3   :  { %2466 = sst [smem:[#allocation9_spill]] %s2439_s2 }
   0x4   :  { %2467 = sst [smem:[#allocation10_spill]] %s2440_s3 }
   0x5   :  { %2468 = sst [smem:[#allocation11_spill]] %s2441_s4 }
   0x6   :  { %2469 = sst [smem:[#allocation12_spill]] %s2442_s5 }
   0x7   :  { %2470 = sst [smem:[#allocation13_spill]] %s2443_s6 }
   0x8   :  { %2471 = sst [smem:[#allocation14_spill]] %s2444_s7 }
   0x9   :  { %2472 = sst [smem:[#allocation15_spill]] %s2455_s18 }
   0xa   :  { %s2473_s24 = sld [smem:[#allocation9_spill]]  ;;  %vm82_vm0 = vcmask 64512  }
   0xb   :  { %s2474_s18 = sld [smem:[#allocation7_spill]] }
   0xc   :  { %s2475_s2 = sld [smem:[#allocation12_spill]] }
   0xd   :  { %s2476_s7 = sld [smem:[#allocation11_spill]] }
  0x10   :  { %v77_v0 = vld [vmem:[%s2473_s24] sm:$0xff] }
  0x11   :  { %v75_v1 = vld [vmem:[%s2474_s18] sm:$0xff]  ;;  %104 = vmatpush.msra.mxu0 %v77_v0 }
  0x12   :  { %v118_v2 = vld [vmem:[%s2475_s2 + $0x18] sm:$0xff]  ;;  %1605 = vmatmul.msk.f32.vlgmr.msra.gmra.mxu0 %vm82_vm0, %v75_v1 }
  0x13   :  { %v114_v3 = vld [vmem:[%s2476_s7] sm:$0xff]  ;;  %138 = vmatpush.msra.mxu1 %v118_v2 }
  0x14   :  { %164 = vmatpush.msra.mxu2 %v114_v3 }
  0x15   :  { %1609 = vmatmul.msk.f32.vlgmr.msra.gmra.mxu2 %vm82_vm0, %v75_v1 }
  0x16   :  { %28 = vsyncpa [#allocation5], 0  ;;  %v76_v4 = vld [vmem:[%s2474_s18 + $0x8] sm:$0xff]  ;;  %v117_v5 = vld [vmem:[%s2475_s2 + $0x10] sm:$0xff]  ;;  %s2477_s1 = sld [smem:[#allocation10_spill]]  ;;  %vm119_vm1 = vcmask 261120   ;;  %v552_v58 = vlaneseq }
  0x17   :  { %139 = vmatpush.msra.mxu1 %v117_v5  ;;  %v116_v6 = vld [vmem:[%s2475_s2 + $0x8] sm:$0xff]  ;;  %v115_v7 = vld [vmem:[%s2475_s2] sm:$0xff]  ;;  %s2478_s27 = sld [smem:[#allocation14_spill]]  ;;  %v1760_v26 = vmov 0.0   ;;  %v341_v30 = vld [vmem:[%s2446_s9 + $0x18] sm:$0xff]  ;;  %vm305_vm2 = vcmask 256000  }
  0x18   :  { %s2479_s28 = sld [smem:[#allocation13_spill]]  ;;  %276 = vst.msk [vmem:[#allocation2] sm:$0xff] %vm119_vm1, %v1760_v26  ;;  %v1943_v29 = vld [vmem:[%s2445_s8] ss:$0 sm:$0xff]  ;;  %v340_v31 = vld [vmem:[%s2446_s9 + $0x10] sm:$0xff]  ;;  %v339_v34 = vld [vmem:[%s2446_s9 + $0x8] sm:$0xff] }
  0x19   :  { %140 = vmatpush.msra.mxu1 %v116_v6  ;;  %s2480_s0 = sld [smem:[#allocation8_spill]]  ;;  %277 = vst.msk [vmem:[#allocation2 + $0x8] sm:$0xff] %vm119_vm1, %v1760_v26  ;;  %v338_v35 = vld [vmem:[%s2446_s9] sm:$0xff]  ;;  %v434_v44 = vld [vmem:[%s2448_s11 + $0x38] sm:$0xff]  ;;  %v433_v45 = vld [vmem:[%s2448_s11 + $0x30] sm:$0xff]  ;;  %v553_v61 = vshrl.u32 %v552_v58, 7 }
  0x1a   :  { %1606 = vmatmul.msk.f32.gmra.mxu0 %vm82_vm0, %v76_v4  ;;  %278 = vst.msk [vmem:[#allocation2 + $0x10] sm:$0xff] %vm119_vm1, %v1760_v26  ;;  %v432_v46 = vld [vmem:[%s2448_s11 + $0x28] sm:$0xff]  ;;  %v431_v47 = vld [vmem:[%s2448_s11 + $0x20] sm:$0xff]  ;;  %v430_v48 = vld [vmem:[%s2448_s11 + $0x18] sm:$0xff]  ;;  %v555_v62 = vand.u32 127, %v552_v58  ;;  %vm439_vm5 = vcmask 523264  }
  0x1b   :  { %141 = vmatpush.msra.mxu1 %v115_v7  ;;  %279 = vst.msk [vmem:[#allocation2 + $0x18] sm:$0xff] %vm119_vm1, %v1760_v26  ;;  %v429_v49 = vld [vmem:[%s2448_s11 + $0x10] sm:$0xff]  ;;  %v428_v50 = vld [vmem:[%s2448_s11 + $0x8] sm:$0xff]  ;;  %v427_v51 = vld [vmem:[%s2448_s11] sm:$0xff]  ;;  %vm499_vm8 = vcmask 1043456   ;;  %vm486_vm9 = vcmask 31744  }
  0x1c   :  { %v1658_v8 = vld [vmem:[%s2477_s1] ss:$0 sm:$0xff]  ;;  %vm556_vm3 = vcmp.eq.s32.totalorder %v553_v61, %v555_v62  ;;  %vm885_vm11 = vcmask 516096   ;;  %s2481_s29 = sld [smem:[#allocation15_spill]]  ;;  %s1766_s26 = smov [#allocation4]  }
  0x1d   :  { %1610 = vmatmul.msk.f32.gmra.mxu2 %vm82_vm0, %v76_v4  ;;  %v178_v15 = vld [vmem:[%s2478_s27] sm:$0xff]  ;;  %460 = vmatpush.msrb.mxu1 %v434_v44  ;;  %v1629_v0 = vsel %vm556_vm3, 1.0, %v1760_v26  ;;  %s1591_s8 = sshll.u32 %s1766_s26, 4  ;;  %s1593_s2 = sshll.u32 %s2460_s23, 4  ;;  %s1592_s8 = int_to_ptr.vmem [resolvable:$true] %s1591_s8  ;;  %s1594_s2 = int_to_ptr.hbm [resolvable:$true] %s1593_s2 }
  0x1e   :  { %268 = vmatpush.msrb.mxu2 %v178_v15  ;;  %300 = vmatpush.msrb.mxu0 %v178_v15  ;;  %v1659_v17 = vld [vmem:[%s2479_s28] ss:$0 sm:$0xff] }
  0x1f   :  { %1650 = vmatpush.msra.mxu3 %v178_v15  ;;  %v281_v25 = vld [vmem:[%s2480_s0] sm:$0x7]  ;;  %v1614_v36 = vld [vmem:[%s2480_s0 + $0x4] sm:$0x7]  ;;  %461 = vmatpush.msrb.mxu1 %v433_v45 }
  0x20   :  { %328 = vmatpush.msra.mxu2 %v178_v15  ;;  %v2003_v52 = vld [vmem:[%s2447_s10] ss:$0 sm:$0xff]  ;;  %s1761_s10 = smov 4  }
  0x21   :  { %370 = vmatpush.msrb.mxu3 %v341_v30  ;;  %462 = vmatpush.msrb.mxu1 %v432_v46  ;;  %v2068_v45 = vld [vmem:[%s2449_s12] ss:$0 sm:$0xff]  ;;  %s1763_s12 = smov 124  }
  0x22   :  { %1613 = vmatmul.msk.f32.vlgmr.msrb.gmra.mxu0 %vm82_vm0, %v281_v25  ;;  %562 = vrot.lane.b32.xlu1 %v1629_v0, %s1761_s10 }
  0x23   :  { %371 = vmatpush.msrb.mxu3 %v340_v31  ;;  %463 = vmatpush.msrb.mxu1 %v431_v47 }
  0x25   :  { %372 = vmatpush.msrb.mxu3 %v339_v34  ;;  %464 = vmatpush.msrb.mxu1 %v430_v48 }
  0x27   :  { %373 = vmatpush.msrb.mxu3 %v338_v35  ;;  %465 = vmatpush.msrb.mxu1 %v429_v49 }
  0x29   :  { %466 = vmatpush.msrb.mxu1 %v428_v50 }
  0x2b   :  { %467 = vmatpush.msrb.mxu1 %v427_v51 }
  0x8f   :  { %v106_v9 = vpop.f32.mrf.mxu0 }
  0x90   :  { %v107_v10 = vadd.f32 %v1658_v8, %v106_v9 }
  0x92   :  { %v112_v11 = vmax.f32 %v107_v10, 0.0 }
  0x94   :  { %1607 = vmatmul.msk.f32.vlgmr.msra.gmra.mxu1 %vm119_vm1, %v112_v11  ;;  %v2082_v51 = vpop.permute.xlu1 %562 }
  0x97   :  { %v109_v12 = vpop.f32.mrf.mxu0 }
  0x98   :  { %v110_v13 = vadd.f32 %v1658_v8, %v109_v12  ;;  %v166_v16 = vpop.f32.mrf.mxu2 }
  0x9a   :  { %v113_v14 = vmax.f32 %v110_v13, 0.0 }
  0x9c   :  { %1608 = vmatmul.msk.f32.gmra.mxu1 %vm119_vm1, %v113_v14 }
  0x9f   :  { %v302_v32 = vpop.f32.mrf.mxu0 }
  0xa0   :  { %v169_v21 = vpop.f32.mrf.mxu2  ;;  %v303_v33 = vadd.f32 %v1943_v29, %v302_v32 }
  0xa2   :  { %306 = vst.msk [vmem:[#allocation2 + $0x8] sm:$0x7] %vm305_vm2, %v303_v33 }
  0xa9   :  { %v335_v42 = vld [vmem:[#allocation2 + $0x8] sm:$0xff] }
 0x111   :  { %v143_v18 = vpop.f32.mrf.mxu1 }
 0x112   :  { %v167_v19 = vadd.f32 %v166_v16, %v143_v18 }
 0x114   :  { %v176_v20 = vadd.f32 %v1659_v17, %v167_v19 }
 0x116   :  { %180 = vxpose.xlu0.b32.start.end [1/1] (short) (narrow) %v176_v20, 8 }
 0x119   :  { %v146_v22 = vpop.f32.mrf.mxu1 }
 0x11a   :  { %v170_v23 = vadd.f32 %v169_v21, %v146_v22 }
 0x11c   :  { %v177_v24 = vadd.f32 %v1659_v17, %v170_v23 }
 0x11e   :  { %212 = vxpose.xlu0.b32.start.end [1/1] (short) (narrow) %v177_v24, 8 }
 0x1ba   :  { %v196_v27 = vpop.trf.xlu0 }
 0x1bb   :  { %1611 = vmatmul.msk.f32.vlgmr.msrb.gmra.mxu2 %vm82_vm0, %v196_v27 }
 0x1c2   :  { %v228_v28 = vpop.trf.xlu0 }
 0x1c3   :  { %1612 = vmatmul.msk.f32.vlgmr.msra.gmra.mxu3 %vm82_vm0, %v228_v28  ;;  %1615 = vmatmul.msk.f32.vlgmr.msra.gmra.mxu2 %vm82_vm0, %v1614_v36 }
 0x23e   :  { %v270_v37 = vpop.f32.mrf.mxu2 }
 0x23f   :  { %v1964_v38 = vadd.f32 %v1943_v29, %v270_v37 }
 0x241   :  { %280 = vst.msk [vmem:[#allocation2] sm:$0xff] %vm119_vm1, %v1964_v38 }
 0x246   :  { %v273_v39 = vpop.f32.mrf.mxu3  ;;  %v330_v30 = vpop.f32.mrf.mxu2 }
 0x247   :  { %v1969_v40 = vadd.f32 %v1943_v29, %v273_v39  ;;  %v331_v31 = vadd.f32 %v1943_v29, %v330_v30 }
 0x248   :  { %v334_v41 = vld [vmem:[#allocation2] sm:$0xff] }
 0x249   :  { %1616 = vmatmul.msk.f32.vlgmr.msrb.gmra.mxu3 %vm119_vm1, %v334_v41  ;;  %307 = vst.msk [vmem:[#allocation2 + $0x10] sm:$0xff] %vm119_vm1, %v1969_v40  ;;  %v481_v41 = vld [vmem:[%s2450_s13] sm:$0xf]  ;;  %s1762_s13 = smov 116  }
 0x24a   :  { %333 = vst.msk [vmem:[#allocation2 + $0x18] sm:$0x7] %vm305_vm2, %v331_v31  ;;  %1624 = vmatpush.msk.msra.mxu0 %vm499_vm8, %v481_v41 }
 0x250   :  { %v336_v43 = vld [vmem:[#allocation2 + $0x10] sm:$0xff] }
 0x251   :  { %1617 = vmatmul.msk.f32.gmra.mxu3 %vm119_vm1, %v335_v42  ;;  %v337_v33 = vld [vmem:[#allocation2 + $0x18] sm:$0xff] }
 0x259   :  { %1618 = vmatmul.msk.f32.gmra.mxu3 %vm119_vm1, %v336_v43 }
 0x261   :  { %1619 = vmatmul.msk.f32.gmra.mxu3 %vm119_vm1, %v337_v33 }
 0x2cc   :  { %v375_v53 = vpop.f32.mrf.mxu3 }
 0x2cd   :  { %v376_v54 = vadd.f32 %v2003_v52, %v375_v53 }
 0x2cf   :  { %v387_v55 = vand.u32 2147483647, %v376_v54  ;;  %vm411_vm4 = vcmp.ge.f32.partialorder %v376_v54, 0.0 }
 0x2d1   :  { %v391_v56 = vsub.f32 0.0, %v387_v55 }
 0x2d3   :  { %v395_v57 = vmul.f32 1.442695, %v391_v56 }
 0x2d4   :  { %v378_v59 = vpop.f32.mrf.mxu3 }
 0x2d5   :  { %1668 = vpow2.f32 %v395_v57  ;;  %v379_v60 = vadd.f32 %v2003_v52, %v378_v59 }
 0x2d7   :  { %v388_v63 = vand.u32 2147483647, %v379_v60  ;;  %vm412_vm6 = vcmp.ge.f32.partialorder %v379_v60, 0.0 }
 0x2d9   :  { %v392_v1 = vsub.f32 0.0, %v388_v63 }
 0x2db   :  { %v1669_v2 = vpop.eup %1668  ;;  %v397_v3 = vmul.f32 1.442695, %v392_v1 }
 0x2dc   :  { %v403_v4 = vadd.f32 1.0, %v1669_v2  ;;  %v381_v5 = vpop.f32.mrf.mxu3 }
 0x2dd   :  { %1670 = vpow2.f32 %v397_v3  ;;  %v382_v6 = vadd.f32 %v2003_v52, %v381_v5 }
 0x2de   :  { %1672 = vrcp.f32 %v403_v4 }
 0x2df   :  { %v389_v7 = vand.u32 2147483647, %v382_v6  ;;  %vm413_vm7 = vcmp.ge.f32.partialorder %v382_v6, 0.0 }
 0x2e1   :  { %v393_v8 = vsub.f32 0.0, %v389_v7 }
 0x2e3   :  { %v1671_v9 = vpop.eup %1670  ;;  %v399_v10 = vmul.f32 1.442695, %v393_v8 }
 0x2e4   :  { %v1673_v11 = vpop.eup %1672  ;;  %v404_v12 = vadd.f32 1.0, %v1671_v9  ;;  %v384_v30 = vpop.f32.mrf.mxu3 }
 0x2e5   :  { %v415_v13 = vmul.f32 %v1673_v11, %v1669_v2  ;;  %1674 = vpow2.f32 %v399_v10  ;;  %v385_v31 = vadd.f32 %v2003_v52, %v384_v30 }
 0x2e6   :  { %1676 = vrcp.f32 %v404_v12 }
 0x2e7   :  { %v419_v14 = vsel %vm411_vm4, %v1673_v11, %v415_v13  ;;  %v390_v41 = vand.u32 2147483647, %v385_v31  ;;  %vm414_vm10 = vcmp.ge.f32.partialorder %v385_v31, 0.0 }
 0x2e8   :  { %v2010_v15 = vmul.f32 %v419_v14, %v376_v54 }
 0x2ea   :  { %888 = vst [vmem:[#allocation1] sm:$0xff] %v2010_v15  ;;  %1620 = vmatmul.msk.f32.vlgmr.msrb.gmra.mxu1 %vm439_vm5, %v2010_v15 }
 0x2eb   :  { %v1675_v16 = vpop.eup %1674 }
 0x2ec   :  { %v1677_v17 = vpop.eup %1676  ;;  %v405_v18 = vadd.f32 1.0, %v1675_v16 }
 0x2ed   :  { %v416_v19 = vmul.f32 %v1677_v17, %v1671_v9 }
 0x2ee   :  { %1678 = vrcp.f32 %v405_v18 }
 0x2ef   :  { %v420_v20 = vsel %vm412_vm6, %v1677_v17, %v416_v19 }
 0x2f0   :  { %v424_v21 = vmul.f32 %v420_v20, %v379_v60 }
 0x2f1   :  { %v2018_v26 = vld [vmem:[#allocation1 + $0x1] ss:$9 sm:$0xff] }
 0x2f2   :  { %1621 = vmatmul.msk.f32.gmra.mxu1 %vm439_vm5, %v424_v21 }
 0x2f4   :  { %v1679_v22 = vpop.eup %1678 }
 0x2f5   :  { %v417_v23 = vmul.f32 %v1679_v22, %v1675_v16 }
 0x2f7   :  { %v421_v24 = vsel %vm413_vm7, %v1679_v22, %v417_v23 }
 0x2f8   :  { %v2016_v25 = vmul.f32 %v421_v24, %v382_v6 }
 0x2fa   :  { %891 = vst [vmem:[#allocation1] sm:$0xff] %v2016_v25  ;;  %1622 = vmatmul.msk.f32.gmra.mxu1 %vm439_vm5, %v2016_v25 }
 0x301   :  { %v2023_v27 = vld [vmem:[#allocation1 + $0x1] ss:$9 sm:$0xff] }
 0x302   :  { %949 = vst [vmem:[#allocation1] sm:$0xff] %v2010_v15 }
 0x309   :  { %v2026_v28 = vld [vmem:[#allocation1 + $0x2] ss:$9 sm:$0xff] }
 0x30a   :  { %952 = vst [vmem:[#allocation1] sm:$0xff] %v2016_v25 }
 0x311   :  { %v2031_v32 = vld [vmem:[#allocation1 + $0x2] ss:$9 sm:$0xff] }
 0x312   :  { %1010 = vst [vmem:[#allocation1] sm:$0xff] %v2010_v15 }
 0x319   :  { %v2035_v34 = vld [vmem:[#allocation1 + $0x3] ss:$9 sm:$0xff] }
 0x31a   :  { %1013 = vst [vmem:[#allocation1] sm:$0xff] %v2016_v25 }
 0x321   :  { %v2038_v35 = vld [vmem:[#allocation1 + $0x3] ss:$9 sm:$0xff] }
 0x322   :  { %1071 = vst [vmem:[#allocation1] sm:$0xff] %v2010_v15 }
 0x329   :  { %v2041_v36 = vld [vmem:[#allocation1 + $0x4] ss:$9 sm:$0xff] }
 0x32a   :  { %1074 = vst [vmem:[#allocation1] sm:$0xff] %v2016_v25 }
 0x331   :  { %v2044_v29 = vld [vmem:[#allocation1 + $0x4] ss:$9 sm:$0xff] }
 0x332   :  { %1132 = vst [vmem:[#allocation1] sm:$0xff] %v2010_v15 }
 0x339   :  { %v2047_v37 = vld [vmem:[#allocation1 + $0x5] ss:$9 sm:$0xff] }
 0x33a   :  { %1135 = vst [vmem:[#allocation1] sm:$0xff] %v2016_v25 }
 0x341   :  { %v2050_v39 = vld [vmem:[#allocation1 + $0x5] ss:$9 sm:$0xff] }
 0x342   :  { %1193 = vst [vmem:[#allocation1] sm:$0xff] %v2010_v15 }
 0x349   :  { %v2056_v42 = vld [vmem:[#allocation1 + $0x6] ss:$9 sm:$0xff] }
 0x34a   :  { %1196 = vst [vmem:[#allocation1] sm:$0xff] %v2016_v25 }
 0x351   :  { %v2059_v43 = vld [vmem:[#allocation1 + $0x6] ss:$9 sm:$0xff] }
 0x352   :  { %1254 = vst [vmem:[#allocation1] sm:$0xff] %v2010_v15 }
 0x359   :  { %v2062_v44 = vld [vmem:[#allocation1 + $0x7] ss:$9 sm:$0xff] }
 0x35a   :  { %1257 = vst [vmem:[#allocation1] sm:$0xff] %v2016_v25 }
 0x367   :  { %v469_v46 = vpop.f32.mrf.mxu1 }
 0x368   :  { %v2071_v47 = vadd.f32 %v2068_v45, %v469_v46 }
 0x36a   :  { %837 = vrot.lane.b32.xlu1 %v2071_v47, %s1762_s13  ;;  %1625 = vmatmul.msk.f32.vlgmr.msra.gmra.mxu0 %vm486_vm9, %v2071_v47  ;;  %v1202_v48 = vrot.slane %v2071_v47, 6  ;;  %v897_v49 = vrot.slane %v2071_v47, 1  ;;  %v559_v50 = vperm.slane %v2071_v47, 0  ;;  %v958_v56 = vrot.slane %v2071_v47, 2 }
 0x36b   :  { %v623_v57 = vperm.slane %v2071_v47, 2  ;;  %v1019_v61 = vrot.slane %v2071_v47, 3  ;;  %v653_v63 = vperm.slane %v2071_v47, 3  ;;  %v1080_v2 = vrot.slane %v2071_v47, 4 }
 0x36c   :  { %1203 = vrot.lane.b32.xlu0 %v1202_v48, %s1762_s13  ;;  %898 = vrot.lane.b32.xlu2 %v897_v49, %s1762_s13  ;;  %v565_v55 = vmul.f32 %v2082_v51, %v559_v50  ;;  %v683_v4 = vperm.slane %v2071_v47, 4  ;;  %v1141_v6 = vrot.slane %v2071_v47, 5  ;;  %v713_v7 = vperm.slane %v2071_v47, 5 }
 0x36d   :  { %v625_v60 = vmul.f32 %v623_v57, %v2082_v51  ;;  %v655_v1 = vmul.f32 %v653_v63, %v2082_v51  ;;  %v593_v8 = vperm.slane %v2071_v47, 1  ;;  %v743_v11 = vperm.slane %v2071_v47, 6 }
 0x36e   :  { %v685_v5 = vmul.f32 %v683_v4, %v2082_v51  ;;  %v715_v9 = vmul.f32 %v713_v7, %v2082_v51  ;;  %v773_v13 = vperm.slane %v2071_v47, 7  ;;  %v394_v48 = vsub.f32 0.0, %v390_v41 }
 0x36f   :  { %v472_v53 = vpop.f32.mrf.mxu1  ;;  %v595_v10 = vmul.f32 %v593_v8, %v2082_v51  ;;  %v745_v12 = vmul.f32 %v743_v11, %v2082_v51 }
 0x370   :  { %v473_v54 = vadd.f32 %v2068_v45, %v472_v53  ;;  %v775_v16 = vmul.f32 %v773_v13, %v2082_v51  ;;  %v401_v50 = vmul.f32 1.442695, %v394_v48 }
 0x372   :  { %569 = vrot.lane.b32.xlu1 %v565_v55, %s1763_s12  ;;  %1626 = vmatmul.msk.f32.gmra.mxu0 %vm486_vm9, %v473_v54  ;;  %1680 = vpow2.f32 %v401_v50 }
 0x374   :  { %959 = vrot.lane.b32.xlu2 %v958_v56, %s1762_s13 }
 0x377   :  { %v475_v58 = vpop.f32.mrf.mxu1 }
 0x378   :  { %v2092_v59 = vadd.f32 %v2068_v45, %v475_v58  ;;  %v1681_v54 = vpop.eup %1680 }
 0x379   :  { %v406_v56 = vadd.f32 1.0, %v1681_v54 }
 0x37a   :  { %629 = vrot.lane.b32.xlu1 %v625_v60, %s1763_s12  ;;  %1627 = vmatmul.msk.f32.gmra.mxu0 %vm486_vm9, %v2092_v59  ;;  %v1044_v62 = vrot.slane %v2092_v59, 3  ;;  %v594_v0 = vperm.slane %v2092_v59, 1  ;;  %v560_v14 = vperm.slane %v2092_v59, 0  ;;  %v624_v18 = vperm.slane %v2092_v59, 2 }
 0x37b   :  { %v922_v19 = vrot.slane %v2092_v59, 1  ;;  %v654_v21 = vperm.slane %v2092_v59, 3  ;;  %v983_v22 = vrot.slane %v2092_v59, 2  ;;  %v684_v24 = vperm.slane %v2092_v59, 4 }
 0x37c   :  { %1020 = vrot.lane.b32.xlu2 %v1019_v61, %s1762_s13  ;;  %1045 = vrot.lane.b32.xlu0 %v1044_v62, %s1762_s13  ;;  %v596_v3 = vmul.f32 %v594_v0, %v2082_v51  ;;  %v566_v17 = vmul.f32 %v2082_v51, %v560_v14  ;;  %v626_v20 = vmul.f32 %v624_v18, %v2082_v51  ;;  %v1166_v33 = vrot.slane %v2092_v59, 5  ;;  %v1663_v14 = vld [vmem:[%s2451_s14] ss:$0 sm:$0xff] }
 0x37d   :  { %v656_v23 = vmul.f32 %v654_v21, %v2082_v51  ;;  %v686_v46 = vmul.f32 %v684_v24, %v2082_v51  ;;  %v714_v49 = vperm.slane %v2092_v59, 5  ;;  %v744_v52 = vperm.slane %v2092_v59, 6 }
 0x37e   :  { %1682 = vrcp.f32 %v406_v56  ;;  %v774_v58 = vperm.slane %v2092_v59, 7 }
 0x37f   :  { %v716_v53 = vmul.f32 %v714_v49, %v2082_v51  ;;  %v746_v57 = vmul.f32 %v744_v52, %v2082_v51 }
 0x380   :  { %v776_v61 = vmul.f32 %v774_v58, %v2082_v51 }
 0x382   :  { %659 = vrot.lane.b32.xlu1 %v655_v1, %s1763_s12 }
 0x384   :  { %1081 = vrot.lane.b32.xlu2 %v1080_v2, %s1762_s13  ;;  %601 = vrot.lane.b32.xlu0 %v596_v3, %s1763_s12  ;;  %v1683_v62 = vpop.eup %1682 }
 0x385   :  { %v418_v63 = vmul.f32 %v1683_v62, %v1681_v54 }
 0x387   :  { %v422_v1 = vsel %vm414_vm10, %v1683_v62, %v418_v63  ;;  %vm1528_vm10 = vcmask 60416  }
 0x388   :  { %v426_v2 = vmul.f32 %v422_v1, %v385_v31 }
 0x38a   :  { %689 = vrot.lane.b32.xlu1 %v685_v5, %s1763_s12  ;;  %1623 = vmatmul.msk.f32.gmra.mxu1 %vm439_vm5, %v426_v2 }
 0x38c   :  { %1142 = vrot.lane.b32.xlu2 %v1141_v6, %s1762_s13 }
 0x392   :  { %719 = vrot.lane.b32.xlu1 %v715_v9, %s1763_s12 }
 0x394   :  { %599 = vrot.lane.b32.xlu2 %v595_v10, %s1763_s12 }
 0x39a   :  { %749 = vrot.lane.b32.xlu1 %v745_v12, %s1763_s12 }
 0x39c   :  { %861 = vrot.lane.b32.xlu2 %v2092_v59, %s1762_s13 }
 0x3a2   :  { %779 = vrot.lane.b32.xlu1 %v775_v16, %s1763_s12 }
 0x3a4   :  { %571 = vrot.lane.b32.xlu2 %v566_v17, %s1763_s12 }
 0x3aa   :  { %923 = vrot.lane.b32.xlu1 %v922_v19, %s1762_s13 }
 0x3ac   :  { %631 = vrot.lane.b32.xlu2 %v626_v20, %s1763_s12 }
 0x3b2   :  { %984 = vrot.lane.b32.xlu1 %v983_v22, %s1762_s13 }
 0x3b4   :  { %661 = vrot.lane.b32.xlu2 %v656_v23, %s1763_s12 }
 0x3ba   :  { %1167 = vrot.lane.b32.xlu1 %v1166_v33, %s1762_s13 }
 0x3bc   :  { %691 = vrot.lane.b32.xlu2 %v686_v46, %s1763_s12 }
 0x3c2   :  { %721 = vrot.lane.b32.xlu1 %v716_v53, %s1763_s12 }
 0x3c6   :  { %v2152_v55 = vpop.permute.xlu2 %898 }
 0x3ca   :  { %751 = vrot.lane.b32.xlu1 %v746_v57, %s1763_s12 }
 0x3ce   :  { %v2157_v60 = vpop.permute.xlu2 %959 }
 0x3d2   :  { %781 = vrot.lane.b32.xlu1 %v776_v61, %s1763_s12 }
 0x3d6   :  { %v2161_v0 = vpop.permute.xlu2 %1020 }
 0x3dc   :  { %v2164_v3 = vpop.permute.xlu1 %837 }
 0x3de   :  { %v2166_v4 = vpop.permute.xlu2 %1081  ;;  %v2172_v12 = vpop.permute.xlu0 %1203 }
 0x3e4   :  { %v570_v5 = vpop.permute.xlu1 %569 }
 0x3e5   :  { %v575_v6 = vsel %vm82_vm0, %v570_v5, 0.0 }
 0x3e6   :  { %v2169_v7 = vpop.permute.xlu2 %1142  ;;  %576 = vadd.xlane.f32.xlu2 %v575_v6 }
 0x3e7   :  { %v520_v51 = vpop.f32.mrf.mxu0 }
 0x3ec   :  { %v630_v8 = vpop.permute.xlu1 %629 }
 0x3ed   :  { %v635_v9 = vsel %vm82_vm0, %v630_v8, 0.0  ;;  %v521_v8 = vadd.f32 %v1663_v14, %v520_v51 }
 0x3ee   :  { %v600_v10 = vpop.permute.xlu2 %599  ;;  %636 = vadd.xlane.f32.xlu0 %v635_v9  ;;  %v2179_v19 = vpop.permute.xlu0 %1045 }
 0x3ef   :  { %v523_v11 = vpop.f32.mrf.mxu0  ;;  %v605_v21 = vsel %vm82_vm0, %v600_v10, 0.0 }
 0x3f0   :  { %v532_v11 = vand.u32 2147483647, %v521_v8 }
 0x3f2   :  { %v534_v51 = vsub.f32 0.0, %v532_v11 }
 0x3f4   :  { %v660_v13 = vpop.permute.xlu1 %659 }
 0x3f5   :  { %v665_v41 = vsel %vm82_vm0, %v660_v13, 0.0 }
 0x3f6   :  { %v2177_v16 = vpop.permute.xlu2 %861  ;;  %v602_v46 = vpop.permute.xlu0 %601 }
 0x3f7   :  { %v525_v17 = vpop.f32.mrf.mxu0  ;;  %v608_v54 = vsel %vm82_vm0, %v602_v46, 0.0 }
 0x3f8   :  { %v526_v18 = vadd.f32 %v1663_v14, %v525_v17  ;;  %v536_v14 = vmul.f32 1.442695, %v534_v51 }
 0x3fa   :  { %v533_v20 = vand.u32 2147483647, %v526_v18  ;;  %v531_v63 = vmax.f32 %v526_v18, 0.0  ;;  %v2199_v18 = vld [vmem:[%s2452_s15] sm:$0xff]  ;;  %s1764_s15 = smov 64  }
 0x3fc   :  { %v535_v22 = vsub.f32 0.0, %v533_v20  ;;  %v690_v23 = vpop.permute.xlu1 %689  ;;  %606 = vadd.xlane.f32.xlu1 %v605_v21 }
 0x3fd   :  { %v695_v24 = vsel %vm82_vm0, %v690_v23, 0.0 }
 0x3fe   :  { %v538_v30 = vmul.f32 1.442695, %v535_v22  ;;  %696 = vadd.xlane.f32.xlu0 %v695_v24  ;;  %v572_v31 = vpop.permute.xlu2 %571 }
 0x3ff   :  { %v578_v33 = vsel %vm82_vm0, %v572_v31, 0.0  ;;  %v1288_v31 = vrot.slane %v2092_v59, 7 }
 0x400   :  { %1684 = vpow2.f32 %v538_v30  ;;  %579 = vadd.xlane.f32.xlu2 %v578_v33 }
 0x404   :  { %v720_v48 = vpop.permute.xlu1 %719  ;;  %666 = vadd.xlane.f32.xlu1 %v665_v41 }
 0x405   :  { %v725_v49 = vsel %vm82_vm0, %v720_v48, 0.0 }
 0x406   :  { %v1685_v50 = vpop.eup %1684  ;;  %726 = vadd.xlane.f32.xlu0 %v725_v49  ;;  %v632_v53 = vpop.permute.xlu2 %631 }
 0x407   :  { %v541_v52 = vadd.f32 1.0, %v1685_v50  ;;  %v638_v56 = vsel %vm82_vm0, %v632_v53, 0.0  ;;  %v530_v53 = vmax.f32 %v521_v8, 0.0 }
 0x408   :  { %609 = vadd.xlane.f32.xlu2 %v608_v54 }
 0x409   :  { %1686 = vlog2.f32 %v541_v52 }
 0x40a   :  { %1688 = vpow2.f32 %v536_v14 }
 0x40c   :  { %v750_v57 = vpop.permute.xlu1 %749  ;;  %639 = vadd.xlane.f32.xlu1 %v638_v56 }
 0x40d   :  { %v755_v58 = vsel %vm82_vm0, %v750_v57, 0.0 }
 0x40e   :  { %756 = vadd.xlane.f32.xlu0 %v755_v58  ;;  %v662_v61 = vpop.permute.xlu2 %661 }
 0x40f   :  { %v1687_v62 = vpop.eup %1686  ;;  %v668_v20 = vsel %vm82_vm0, %v662_v61, 0.0  ;;  %v1105_v61 = vrot.slane %v2092_v59, 4 }
 0x410   :  { %v545_v1 = vmul.f32 0.6931472, %v1687_v62  ;;  %v1689_v24 = vpop.eup %1688 }
 0x411   :  { %v540_v30 = vadd.f32 1.0, %v1689_v24 }
 0x412   :  { %v2190_v9 = vadd.f32 %v545_v1, %v531_v63  ;;  %v1263_v63 = vrot.slane %v2071_v47, 7  ;;  %v1227_v47 = vrot.slane %v2092_v59, 6 }
 0x413   :  { %1690 = vlog2.f32 %v540_v30 }
 0x414   :  { %v780_v2 = vpop.permute.xlu1 %779  ;;  %v792_v13 = vperm.slane %v2190_v9, 7 }
 0x415   :  { %v785_v5 = vsel %vm82_vm0, %v780_v2, 0.0  ;;  %v478_v2 = vpop.f32.mrf.mxu1 }
 0x416   :  { %786 = vadd.xlane.f32.xlu0 %v785_v5  ;;  %v692_v6 = vpop.permute.xlu2 %691  ;;  %v2203_v21 = vmul.f32 %v792_v13, %v2199_v18 }
 0x417   :  { %v698_v10 = vsel %vm82_vm0, %v692_v6, 0.0  ;;  %v479_v6 = vadd.f32 %v2068_v45, %v478_v2  ;;  %v582_v45 = vperm.slane %v2190_v9, 0 }
 0x418   :  { %699 = vadd.xlane.f32.xlu1 %v698_v10 }
 0x419   :  { %v1691_v46 = vpop.eup %1690  ;;  %1628 = vmatmul.msk.f32.gmra.mxu0 %vm486_vm9, %v479_v6  ;;  %v584_v30 = vmul.f32 %v582_v45, %v2199_v18 }
 0x41a   :  { %v543_v49 = vmul.f32 0.6931472, %v1691_v46 }
 0x41c   :  { %v2194_v17 = vpop.permute.xlu1 %923  ;;  %v2215_v52 = vadd.f32 %v543_v49, %v530_v53 }
 0x41e   :  { %669 = vadd.xlane.f32.xlu0 %v668_v20  ;;  %v581_v57 = vperm.slane %v2215_v52, 0  ;;  %v2225_v1 = vmul.f32 %v2215_v52, %v2010_v15  ;;  %v611_v51 = vperm.slane %v2215_v52, 1  ;;  %v641_v24 = vperm.slane %v2215_v52, 2 }
 0x41f   :  { %v671_v59 = vperm.slane %v2215_v52, 3  ;;  %v701_v46 = vperm.slane %v2215_v52, 4  ;;  %v761_v45 = vperm.slane %v2215_v52, 6 }
 0x420   :  { %v583_v58 = vmul.f32 %v581_v57, %v2199_v18  ;;  %v589_v8 = vperm.slane %v2225_v1, 0  ;;  %v613_v14 = vmul.f32 %v611_v51, %v2199_v18 }
 0x421   :  { %v673_v49 = vmul.f32 %v671_v59, %v2199_v18  ;;  %v703_v53 = vmul.f32 %v701_v46, %v2199_v18 }
 0x422   :  { %v585_v62 = vmul.f32 1.442695, %v583_v58  ;;  %v642_v58 = vperm.slane %v2190_v9, 2 }
 0x424   :  { %v2205_v22 = vpop.permute.xlu1 %984  ;;  %1692 = vpow2.f32 %v585_v62  ;;  %v2254_v62 = vmul.f32 %v2190_v9, %v2016_v25  ;;  %v644_v51 = vmul.f32 %v642_v58, %v2199_v18 }
 0x42a   :  { %v1693_v5 = vpop.eup %1692 }
 0x42b   :  { %v803_v11 = vmul.f32 0.0, %v1693_v5  ;;  %v705_v5 = vmul.f32 1.442695, %v703_v53 }
 0x42c   :  { %v2207_v23 = vpop.permute.xlu1 %1167 }
 0x432   :  { %1289 = vrot.lane.b32.xlu0 %v1288_v31, %s1762_s13  ;;  %v615_v31 = vmul.f32 1.442695, %v613_v14  ;;  %v649_v14 = vperm.slane %v2225_v1, 2 }
 0x434   :  { %v722_v33 = vpop.permute.xlu1 %721  ;;  %1694 = vpow2.f32 %v615_v31 }
 0x435   :  { %v728_v41 = vsel %vm82_vm0, %v722_v33, 0.0  ;;  %v643_v33 = vmul.f32 %v641_v24, %v2199_v18 }
 0x436   :  { %729 = vadd.xlane.f32.xlu2 %v728_v41  ;;  %v587_v41 = vmul.f32 1.442695, %v584_v30  ;;  %v590_v30 = vperm.slane %v2254_v62, 0 }
 0x438   :  { %1696 = vpow2.f32 %v587_v41 }
 0x43a   :  { %1317 = vrot.lane.b32.xlu0 %v2010_v15, %s1764_s15 }
 0x43c   :  { %v752_v48 = vpop.permute.xlu1 %751 }
 0x43d   :  { %v758_v50 = vsel %vm82_vm0, %v752_v48, 0.0  ;;  %v645_v48 = vmul.f32 1.442695, %v643_v33 }
 0x43e   :  { %759 = vadd.xlane.f32.xlu1 %v758_v50  ;;  %v612_v50 = vperm.slane %v2190_v9, 1 }
 0x43f   :  { %1698 = vpow2.f32 %v645_v48 }
 0x440   :  { %v614_v57 = vmul.f32 %v612_v50, %v2199_v18  ;;  %v763_v50 = vmul.f32 %v761_v45, %v2199_v18 }
 0x444   :  { %v782_v54 = vpop.permute.xlu1 %781 }
 0x445   :  { %v788_v56 = vsel %vm82_vm0, %v782_v54, 0.0  ;;  %v731_v54 = vperm.slane %v2215_v52, 5 }
 0x446   :  { %789 = vadd.xlane.f32.xlu1 %v788_v56  ;;  %v675_v56 = vmul.f32 1.442695, %v673_v49  ;;  %v647_v49 = vmul.f32 1.442695, %v644_v51 }
 0x447   :  { %v733_v6 = vmul.f32 %v731_v54, %v2199_v18  ;;  %v679_v54 = vperm.slane %v2225_v1, 3 }
 0x448   :  { %1700 = vpow2.f32 %v675_v56 }
 0x449   :  { %1702 = vpow2.f32 %v705_v5  ;;  %v735_v59 = vmul.f32 1.442695, %v733_v6  ;;  %v765_v6 = vmul.f32 1.442695, %v763_v50 }
 0x44e   :  { %1106 = vrot.lane.b32.xlu2 %v1105_v61, %s1762_s13  ;;  %v619_v61 = vperm.slane %v2225_v1, 1 }
 0x456   :  { %1264 = vrot.lane.b32.xlu2 %v1263_v63, %s1762_s13  ;;  %v1695_v63 = vpop.eup %1694 }
 0x459   :  { %v577_v10 = vpop.xlane.xlu2 %576 }
 0x45a   :  { %v591_v13 = vmul.f32 %v589_v8, %v577_v10 }
 0x45c   :  { %v805_v20 = vadd.f32 %v803_v11, %v591_v13  ;;  %v1697_v11 = vpop.eup %1696 }
 0x45d   :  { %v1699_v31 = vpop.eup %1698  ;;  %v804_v48 = vmul.f32 0.0, %v1697_v11 }
 0x45e   :  { %1228 = vrot.lane.b32.xlu2 %v1227_v47, %s1762_s13  ;;  %856 = vmatpush.msrb.mxu2 %v805_v20  ;;  %v807_v10 = vmul.f32 %v1695_v63, %v805_v20  ;;  %v617_v47 = vmul.f32 1.442695, %v614_v57  ;;  %v1701_v57 = vpop.eup %1700 }
 0x45f   :  { %1630 = vmatmul.msk.f32.vlgmr.msrb.gmra.mxu2 %vm82_vm0, %v2164_v3 }
 0x460   :  { %1704 = vpow2.f32 %v617_v47 }
 0x461   :  { %v637_v3 = vpop.xlane.xlu0 %636  ;;  %1706 = vpow2.f32 %v735_v59  ;;  %v650_v59 = vperm.slane %v2254_v62, 2 }
 0x462   :  { %v651_v41 = vmul.f32 %v649_v14, %v637_v3  ;;  %v1703_v3 = vpop.eup %1702  ;;  %1708 = vpow2.f32 %v647_v49 }
 0x463   :  { %1710 = vpow2.f32 %v765_v6  ;;  %v799_v6 = vperm.slane %v2225_v1, 7 }
 0x466   :  { %1319 = vrot.lane.b32.xlu2 %v2016_v25, %s1764_s15  ;;  %v1705_v11 = vpop.eup %1704 }
 0x46f   :  { %v607_v2 = vpop.xlane.xlu1 %606 }
 0x470   :  { %v621_v8 = vmul.f32 %v619_v61, %v607_v2  ;;  %v791_v61 = vperm.slane %v2215_v52, 7  ;;  %v620_v52 = vperm.slane %v2254_v62, 1 }
 0x471   :  { %v697_v13 = vpop.xlane.xlu0 %696 }
 0x472   :  { %v809_v24 = vadd.f32 %v807_v10, %v621_v8  ;;  %v709_v8 = vperm.slane %v2225_v1, 4  ;;  %v793_v51 = vmul.f32 %v791_v61, %v2199_v18 }
 0x473   :  { %v580_v33 = vpop.xlane.xlu2 %579 }
 0x474   :  { %v811_v46 = vmul.f32 %v1699_v31, %v809_v24  ;;  %v592_v20 = vmul.f32 %v590_v30, %v580_v33  ;;  %v711_v45 = vmul.f32 %v709_v8, %v697_v13  ;;  %v672_v13 = vperm.slane %v2190_v9, 3 }
 0x476   :  { %v806_v53 = vadd.f32 %v804_v48, %v592_v20  ;;  %v813_v56 = vadd.f32 %v811_v46, %v651_v41  ;;  %v795_v48 = vmul.f32 1.442695, %v793_v51  ;;  %v674_v61 = vmul.f32 %v672_v13, %v2199_v18 }
 0x477   :  { %v667_v58 = vpop.xlane.xlu1 %666  ;;  %v740_v13 = vperm.slane %v2254_v62, 5 }
 0x478   :  { %v681_v63 = vmul.f32 %v679_v54, %v667_v58  ;;  %v815_v2 = vmul.f32 %v1701_v57, %v813_v56  ;;  %880 = vmatpush.msra.mxu2 %v806_v53  ;;  %978 = vmatpush.msra.mxu3 %v813_v56  ;;  %v808_v31 = vmul.f32 %v1705_v11, %v806_v53  ;;  %v769_v57 = vperm.slane %v2225_v1, 6 }
 0x479   :  { %v727_v5 = vpop.xlane.xlu0 %726  ;;  %1631 = vmatmul.msk.f32.vlgmr.msra.gmra.mxu2 %vm82_vm0, %v2177_v16  ;;  %1634 = vmatmul.msk.f32.vlgmr.msra.gmra.mxu3 %vm82_vm0, %v2157_v60  ;;  %v739_v16 = vperm.slane %v2225_v1, 5  ;;  %v1707_v60 = vpop.eup %1706  ;;  %1712 = vpow2.f32 %v795_v48 }
 0x47a   :  { %v817_v10 = vadd.f32 %v815_v2, %v681_v63  ;;  %917 = vmatpush.msrb.mxu2 %v809_v24  ;;  %v1709_v41 = vpop.eup %1708  ;;  %v702_v63 = vperm.slane %v2190_v9, 4 }
 0x47b   :  { %v610_v47 = vpop.xlane.xlu2 %609  ;;  %v741_v46 = vmul.f32 %v739_v16, %v727_v5  ;;  %v1711_v58 = vpop.eup %1710 }
 0x47c   :  { %v819_v14 = vmul.f32 %v1703_v3, %v817_v10  ;;  %v622_v30 = vmul.f32 %v620_v52, %v610_v47  ;;  %1039 = vmatpush.msrb.mxu0 %v817_v10  ;;  %v704_v5 = vmul.f32 %v702_v63, %v2199_v18  ;;  %v680_v47 = vperm.slane %v2254_v62, 3 }
 0x47d   :  { %1636 = vmatmul.msk.f32.vlgmr.msrb.gmra.mxu0 %vm82_vm0, %v2161_v0 }
 0x47e   :  { %v821_v33 = vadd.f32 %v819_v14, %v711_v45  ;;  %v810_v24 = vadd.f32 %v808_v31, %v622_v30  ;;  %v707_v11 = vmul.f32 1.442695, %v704_v5  ;;  %v710_v31 = vperm.slane %v2254_v62, 4 }
 0x47f   :  { %v640_v20 = vpop.xlane.xlu1 %639  ;;  %v1713_v8 = vpop.eup %1712 }
 0x480   :  { %v823_v49 = vmul.f32 %v1707_v60, %v821_v33  ;;  %v652_v50 = vmul.f32 %v650_v59, %v640_v20  ;;  %v812_v53 = vmul.f32 %v1709_v41, %v810_v24  ;;  %942 = vmatpush.msra.mxu2 %v810_v24  ;;  %1100 = vmatpush.msrb.mxu3 %v821_v33  ;;  %v732_v33 = vperm.slane %v2190_v9, 5 }
 0x481   :  { %v757_v54 = vpop.xlane.xlu0 %756  ;;  %1632 = vmatmul.msk.f32.vlgmr.msrb.gmra.mxu2 %vm82_vm0, %v2152_v55  ;;  %1638 = vmatmul.msk.f32.vlgmr.msrb.gmra.mxu3 %vm82_vm0, %v2166_v4  ;;  %v677_v4 = vmul.f32 1.442695, %v674_v61 }
 0x482   :  { %v825_v0 = vadd.f32 %v823_v49, %v741_v46  ;;  %v814_v56 = vadd.f32 %v812_v53, %v652_v50  ;;  %v771_v2 = vmul.f32 %v769_v57, %v757_v54  ;;  %v734_v59 = vmul.f32 %v732_v33, %v2199_v18 }
 0x483   :  { %1714 = vpow2.f32 %v677_v4  ;;  %v762_v46 = vperm.slane %v2190_v9, 6  ;;  %v770_v9 = vperm.slane %v2254_v62, 6 }
 0x484   :  { %v827_v3 = vmul.f32 %v1711_v58, %v825_v0  ;;  %1003 = vmatpush.msra.mxu1 %v814_v56  ;;  %1161 = vmatpush.msra.mxu0 %v825_v0  ;;  %1716 = vpow2.f32 %v707_v11  ;;  %v737_v41 = vmul.f32 1.442695, %v734_v59 }
 0x485   :  { %1635 = vmatmul.msk.f32.vlgmr.msra.gmra.mxu1 %vm82_vm0, %v2205_v22  ;;  %1640 = vmatmul.msk.f32.vlgmr.msra.gmra.mxu0 %vm82_vm0, %v2169_v7  ;;  %v764_v20 = vmul.f32 %v762_v46, %v2199_v18 }
 0x486   :  { %v829_v55 = vadd.f32 %v827_v3, %v771_v2  ;;  %1718 = vpow2.f32 %v737_v41 }
 0x487   :  { %v767_v48 = vmul.f32 1.442695, %v764_v20 }
 0x488   :  { %1222 = vmatpush.msra.mxu3 %v829_v55  ;;  %v831_v22 = vmul.f32 %v1713_v8, %v829_v55 }
 0x489   :  { %v787_v10 = vpop.xlane.xlu0 %786  ;;  %1633 = vmatmul.msk.f32.vlgmr.msra.gmra.mxu2 %vm82_vm0, %v2194_v17  ;;  %1642 = vmatmul.msk.f32.vlgmr.msra.gmra.mxu3 %vm82_vm0, %v2172_v12  ;;  %v1715_v51 = vpop.eup %1714  ;;  %1720 = vpow2.f32 %v767_v48 }
 0x48a   :  { %v801_v52 = vmul.f32 %v799_v6, %v787_v10  ;;  %v816_v14 = vmul.f32 %v1715_v51, %v814_v56  ;;  %v1717_v16 = vpop.eup %1716 }
 0x48b   :  { %v700_v30 = vpop.xlane.xlu1 %699 }
 0x48c   :  { %v833_v7 = vadd.f32 %v831_v22, %v801_v52  ;;  %v712_v60 = vmul.f32 %v710_v31, %v700_v30  ;;  %v1719_v49 = vpop.eup %1718  ;;  %v2314_v52 = vld [vmem:[%s2453_s16] sm:$0x1] }
 0x48d   :  { %v1078_v33 = vmul.f32 %v2041_v36, %v2314_v52 }
 0x48e   :  { %1283 = vmatpush.msrb.mxu0 %v833_v7  ;;  %v1017_v7 = vmul.f32 %v2035_v34, %v2314_v52  ;;  %v957_v34 = vmul.f32 %v2031_v32, %v2314_v52  ;;  %v896_v32 = vmul.f32 %v2023_v27, %v2314_v52 }
 0x48f   :  { %v1721_v56 = vpop.eup %1720 }
 0x491   :  { %v670_v45 = vpop.xlane.xlu0 %669 }
 0x492   :  { %v682_v1 = vmul.f32 %v680_v47, %v670_v45  ;;  %v836_v45 = vmul.f32 %v2314_v52, %v2016_v25 }
 0x494   :  { %v818_v17 = vadd.f32 %v816_v14, %v682_v1  ;;  %v956_v1 = vmul.f32 %v2026_v28, %v2314_v52 }
 0x496   :  { %v820_v12 = vmul.f32 %v1717_v16, %v818_v17  ;;  %1064 = vmatpush.msrb.mxu2 %v818_v17  ;;  %v528_v10 = vpop.f32.mrf.mxu0  ;;  %v1139_v17 = vmul.f32 %v2047_v37, %v2314_v52 }
 0x497   :  { %1637 = vmatmul.msk.f32.vlgmr.msrb.gmra.mxu2 %vm82_vm0, %v2179_v19  ;;  %v797_v19 = vmul.f32 1.442695, %v2203_v21  ;;  %v800_v21 = vperm.slane %v2254_v62, 7  ;;  %v835_v62 = vmul.f32 %v2314_v52, %v2010_v15 }
 0x498   :  { %v822_v24 = vadd.f32 %v820_v12, %v712_v60  ;;  %v895_v12 = vmul.f32 %v2018_v26, %v2314_v52  ;;  %v1200_v26 = vmul.f32 %v2056_v42, %v2314_v52  ;;  %v1331_v42 = vld [vmem:[%s2454_s17 + $0x30] sm:$0xff] }
 0x499   :  { %1722 = vpow2.f32 %v797_v19  ;;  %v1327_v19 = vld [vmem:[%s2454_s17 + $0x10] sm:$0xff] }
 0x49a   :  { %1125 = vmatpush.msrb.mxu1 %v822_v24  ;;  %v824_v54 = vmul.f32 %v1719_v49, %v822_v24  ;;  %v1018_v49 = vmul.f32 %v2038_v35, %v2314_v52  ;;  %v1328_v35 = vld [vmem:[%s2454_s17 + $0x18] sm:$0xff] }
 0x49f   :  { %v1723_v2 = vpop.eup %1722 }
 0x4a4   :  { %v1290_v6 = vpop.permute.xlu0 %1289 }
 0x4a9   :  { %v730_v50 = vpop.xlane.xlu2 %729 }
 0x4aa   :  { %v742_v53 = vmul.f32 %v740_v13, %v730_v50  ;;  %v1332_v13 = vld [vmem:[%s2454_s17 + $0x38] sm:$0xff]  ;;  %v1330_v50 = vld [vmem:[%s2454_s17 + $0x28] sm:$0xff] }
 0x4ab   :  { %1347 = vmatpush.msrb.mxu3 %v1332_v13  ;;  %v1466_v13 = vld [vmem:[%s2458_s21 + $0x8] sm:$0xff] }
 0x4ac   :  { %v826_v0 = vadd.f32 %v824_v54, %v742_v53  ;;  %v1329_v54 = vld [vmem:[%s2454_s17 + $0x20] sm:$0xff] }
 0x4ad   :  { %1348 = vmatpush.msrb.mxu3 %v1331_v42 }
 0x4ae   :  { %1186 = vmatpush.msra.mxu2 %v826_v0  ;;  %v828_v61 = vmul.f32 %v1721_v56, %v826_v0  ;;  %v1326_v0 = vld [vmem:[%s2454_s17 + $0x8] sm:$0xff]  ;;  %v1079_v56 = vmul.f32 %v2044_v29, %v2314_v52  ;;  %v1201_v29 = vmul.f32 %v2059_v43, %v2314_v52  ;;  %v1664_v43 = vld [vmem:[%s2481_s29] ss:$0 sm:$0xff] }
 0x4af   :  { %1641 = vmatmul.msk.f32.vlgmr.msra.gmra.mxu2 %vm82_vm0, %v2207_v23  ;;  %1349 = vmatpush.msrb.mxu3 %v1330_v50 }
 0x4b1   :  { %v760_v18 = vpop.xlane.xlu1 %759  ;;  %v1107_v57 = vpop.permute.xlu2 %1106  ;;  %1350 = vmatpush.msrb.mxu3 %v1329_v54 }
 0x4b2   :  { %v772_v58 = vmul.f32 %v770_v9, %v760_v18  ;;  %1639 = vmatmul.msk.f32.vlgmr.msrb.gmra.mxu1 %vm82_vm0, %v1107_v57  ;;  %v1325_v9 = vld [vmem:[%s2454_s17] sm:$0xff] }
 0x4b3   :  { %1351 = vmatpush.msrb.mxu3 %v1328_v35 }
 0x4b4   :  { %v830_v63 = vadd.f32 %v828_v61, %v772_v58  ;;  %v1140_v58 = vmul.f32 %v2050_v39, %v2314_v52  ;;  %v1318_v39 = vpop.permute.xlu0 %1317 }
 0x4b5   :  { %1352 = vmatpush.msrb.mxu3 %v1327_v19 }
 0x4b6   :  { %1247 = vmatpush.msra.mxu1 %v830_v63  ;;  %v832_v3 = vmul.f32 %v1723_v2, %v830_v63  ;;  %v1261_v2 = vmul.f32 %v2062_v44, %v2314_v52 }
 0x4b7   :  { %1353 = vmatpush.msrb.mxu3 %v1326_v0 }
 0x4b9   :  { %v790_v55 = vpop.xlane.xlu1 %789  ;;  %v1265_v4 = vpop.permute.xlu2 %1264  ;;  %1354 = vmatpush.msrb.mxu3 %v1325_v9 }
 0x4ba   :  { %v802_v5 = vmul.f32 %v800_v21, %v790_v55  ;;  %1644 = vmatmul.msk.f32.vlgmr.msrb.gmra.mxu0 %vm82_vm0, %v1265_v4  ;;  %v1258_v55 = vld [vmem:[#allocation1 + $0x7] ss:$9 sm:$0xff] }
 0x4bc   :  { %v834_v23 = vadd.f32 %v832_v3, %v802_v5 }
 0x4be   :  { %1308 = vmatpush.msrb.mxu2 %v834_v23  ;;  %v1262_v23 = vmul.f32 %v1258_v55, %v2314_v52 }
 0x4bf   :  { %1645 = vmatmul.msk.f32.vlgmr.msrb.gmra.mxu2 %vm82_vm0, %v1290_v6 }
 0x4c1   :  { %v1229_v8 = vpop.permute.xlu2 %1228 }
 0x4c2   :  { %1643 = vmatmul.msk.f32.vlgmr.msra.gmra.mxu1 %vm82_vm0, %v1229_v8 }
 0x4c9   :  { %v1320_v44 = vpop.permute.xlu2 %1319 }
 0x4e2   :  { %v858_v22 = vpop.f32.mrf.mxu2 }
 0x4e3   :  { %v859_v11 = vadd.f32 %v858_v22, %v835_v62 }
 0x4e5   :  { %886 = vst.msk [vmem:[#allocation3] sm:$0x1] %vm885_vm11, %v859_v11 }
 0x4fa   :  { %v1041_v47 = vpop.f32.mrf.mxu0 }
 0x4fb   :  { %v1042_v51 = vadd.f32 %v1041_v47, %v1017_v7 }
 0x4fc   :  { %v882_v14 = vpop.f32.mrf.mxu2  ;;  %v980_v30 = vpop.f32.mrf.mxu3 }
 0x4fd   :  { %1069 = vst.msk [vmem:[#allocation3 + $0x3] sm:$0x1] %vm885_vm11, %v1042_v51  ;;  %v883_v15 = vadd.f32 %v882_v14, %v836_v45  ;;  %v981_v31 = vadd.f32 %v980_v30, %v956_v1 }
 0x4ff   :  { %887 = vst.msk [vmem:[#allocation3 + $0x8] sm:$0x1] %vm885_vm11, %v883_v15  ;;  %v1765_v15 = vmov 32.0  }
 0x500   :  { %1008 = vst.msk [vmem:[#allocation3 + $0x2] sm:$0x1] %vm885_vm11, %v981_v31  ;;  %1724 = vrcp.f32 %v1765_v15 }
 0x502   :  { %v1005_v25 = vpop.f32.mrf.mxu1  ;;  %v1163_v16 = vpop.f32.mrf.mxu0 }
 0x503   :  { %v1006_v60 = vadd.f32 %v1005_v25, %v957_v34  ;;  %v1164_v28 = vadd.f32 %v1163_v16, %v1139_v17 }
 0x504   :  { %v919_v24 = vpop.f32.mrf.mxu2  ;;  %v1102_v59 = vpop.f32.mrf.mxu3 }
 0x505   :  { %1009 = vst.msk [vmem:[#allocation3 + $0xa] sm:$0x1] %vm885_vm11, %v1006_v60  ;;  %v920_v41 = vadd.f32 %v919_v24, %v895_v12  ;;  %v1103_v46 = vadd.f32 %v1102_v59, %v1078_v33 }
 0x506   :  { %1191 = vst.msk [vmem:[#allocation3 + $0x5] sm:$0x1] %vm885_vm11, %v1164_v28  ;;  %v1725_v31 = vpop.eup %1724 }
 0x507   :  { %947 = vst.msk [vmem:[#allocation3 + $0x1] sm:$0x1] %vm885_vm11, %v920_v41  ;;  %v1377_v34 = vmul.f32 32.0, %v1725_v31  ;;  %vm1381_vm12 = vweird.f32 %v1725_v31 }
 0x508   :  { %1130 = vst.msk [vmem:[#allocation3 + $0x4] sm:$0x1] %vm885_vm11, %v1103_v46 }
 0x509   :  { %v1378_v17 = vsub.f32 1.0, %v1377_v34 }
 0x50b   :  { %v1379_v25 = vmul.f32 %v1725_v31, %v1378_v17 }
 0x50c   :  { %v944_v37 = vpop.f32.mrf.mxu2  ;;  %v1224_v36 = vpop.f32.mrf.mxu3 }
 0x50d   :  { %v945_v20 = vadd.f32 %v944_v37, %v896_v32  ;;  %v1225_v48 = vadd.f32 %v1224_v36, %v1200_v26  ;;  %v1380_v16 = vadd.f32 %v1725_v31, %v1379_v25 }
 0x50f   :  { %948 = vst.msk [vmem:[#allocation3 + $0x9] sm:$0x1] %vm885_vm11, %v945_v20  ;;  %v1468_v20 = vld [vmem:[%s2458_s21 + $0x18] sm:$0xff] }
 0x510   :  { %1252 = vst.msk [vmem:[#allocation3 + $0x6] sm:$0x1] %vm885_vm11, %v1225_v48  ;;  %v1467_v48 = vld [vmem:[%s2458_s21 + $0x10] sm:$0xff]  ;;  %1488 = vmatpush.msrb.mxu1 %v1468_v20  ;;  %1545 = vmatpush.msra.mxu0 %v1468_v20 }
 0x512   :  { %1489 = vmatpush.msrb.mxu1 %v1467_v48  ;;  %1546 = vmatpush.msra.mxu0 %v1467_v48 }
 0x514   :  { %1490 = vmatpush.msrb.mxu1 %v1466_v13  ;;  %1547 = vmatpush.msra.mxu0 %v1466_v13 }
 0x51a   :  { %v1066_v27 = vpop.f32.mrf.mxu2 }
 0x51b   :  { %v1067_v53 = vadd.f32 %v1066_v27, %v1018_v49  ;;  %v1465_v49 = vld [vmem:[%s2458_s21] sm:$0xff] }
 0x51c   :  { %1491 = vmatpush.msrb.mxu1 %v1465_v49  ;;  %1548 = vmatpush.msra.mxu0 %v1465_v49 }
 0x51d   :  { %1070 = vst.msk [vmem:[#allocation3 + $0xb] sm:$0x1] %vm885_vm11, %v1067_v53 }
 0x52f   :  { %v1127_v18 = vpop.f32.mrf.mxu1 }
 0x530   :  { %v1128_v57 = vadd.f32 %v1127_v18, %v1079_v56 }
 0x532   :  { %1131 = vst.msk [vmem:[#allocation3 + $0xc] sm:$0x1] %vm885_vm11, %v1128_v57  ;;  %v1188_v61 = vpop.f32.mrf.mxu2 }
 0x533   :  { %v1189_v63 = vadd.f32 %v1188_v61, %v1140_v58 }
 0x535   :  { %1192 = vst.msk [vmem:[#allocation3 + $0xd] sm:$0x1] %vm885_vm11, %v1189_v63 }
 0x537   :  { %v1285_v3 = vpop.f32.mrf.mxu0 }
 0x538   :  { %v1286_v21 = vadd.f32 %v1285_v3, %v1261_v2 }
 0x53a   :  { %1313 = vst.msk [vmem:[#allocation3 + $0x7] sm:$0x1] %vm885_vm11, %v1286_v21 }
 0x53f   :  { %v1249_v4 = vpop.f32.mrf.mxu1 }
 0x540   :  { %v1250_v5 = vadd.f32 %v1249_v4, %v1201_v29 }
 0x541   :  { %v1315_v6 = vld [vmem:[#allocation3] sm:$0xff] }
 0x542   :  { %1253 = vst.msk [vmem:[#allocation3 + $0xe] sm:$0x1] %vm885_vm11, %v1250_v5  ;;  %v1310_v8 = vpop.f32.mrf.mxu2  ;;  %v1323_v10 = vmul.f32 %v1318_v39, %v1315_v6 }
 0x543   :  { %v1311_v62 = vadd.f32 %v1310_v8, %v1262_v23 }
 0x544   :  { %1646 = vmatmul.msk.f32.vlgmr.msrb.gmra.mxu3 %vm439_vm5, %v1323_v10 }
 0x545   :  { %1314 = vst.msk [vmem:[#allocation3 + $0xf] sm:$0x1] %vm885_vm11, %v1311_v62 }
 0x54c   :  { %v1316_v22 = vld [vmem:[#allocation3 + $0x8] sm:$0xff] }
 0x54d   :  { %v1324_v11 = vmul.f32 %v1320_v44, %v1316_v22 }
 0x54f   :  { %1647 = vmatmul.msk.f32.gmra.mxu3 %vm439_vm5, %v1324_v11 }
 0x5c7   :  { %v1356_v52 = vpop.f32.mrf.mxu3 }
 0x5c8   :  { %v1362_v7 = vadd.f32 %v1356_v52, %v1964_v38  ;;  %v1382_v38 = vsel %vm1381_vm12, %v1725_v31, %v1380_v16  ;;  %v1665_v52 = vld [vmem:[%s2456_s19] ss:$0 sm:$0xff] }
 0x5ca   :  { %v1368_v47 = vadd.f32 %v1664_v43, %v1362_v7 }
 0x5cc   :  { %v1370_v51 = vsel %vm119_vm1, %v1368_v47, 0.0 }
 0x5cd   :  { %1371 = vadd.xlane.f32.xlu0 %v1370_v51 }
 0x5d2   :  { %v1359_v45 = vpop.f32.mrf.mxu3 }
 0x5d3   :  { %v1363_v1 = vadd.f32 %v1359_v45, %v1969_v40  ;;  %v1666_v45 = vld [vmem:[%s2457_s20] ss:$0 sm:$0xff] }
 0x5d5   :  { %v1369_v14 = vadd.f32 %v1664_v43, %v1363_v1 }
 0x5d7   :  { %v1373_v30 = vsel %vm119_vm1, %v1369_v14, 0.0 }
 0x5d8   :  { %1374 = vadd.xlane.f32.xlu2 %v1373_v30 }
 0x640   :  { %v1372_v60 = vpop.xlane.xlu0 %1371 }
 0x641   :  { %v1383_v28 = vmul.f32 %v1382_v38, %v1372_v60 }
 0x643   :  { %v2396_v12 = vsub.f32 %v1368_v47, %v1383_v28 }
 0x645   :  { %v1387_v40 = vmul.f32 %v2396_v12, %v2396_v12 }
 0x647   :  { %v1389_v33 = vsel %vm119_vm1, %v1387_v40, 0.0 }
 0x648   :  { %1390 = vadd.xlane.f32.xlu1 %v1389_v33  ;;  %v1667_v33 = vld [vmem:[%s2459_s22] ss:$0 sm:$0xff] }
 0x64b   :  { %v1375_v24 = vpop.xlane.xlu2 %1374 }
 0x64c   :  { %v1384_v59 = vmul.f32 %v1382_v38, %v1375_v24 }
 0x64e   :  { %v2401_v41 = vsub.f32 %v1369_v14, %v1384_v59 }
 0x650   :  { %v1388_v46 = vmul.f32 %v2401_v41, %v2401_v41 }
 0x652   :  { %v1392_v32 = vsel %vm119_vm1, %v1388_v46, 0.0 }
 0x653   :  { %1393 = vadd.xlane.f32.xlu1 %v1392_v32 }
 0x6bb   :  { %v1391_v26 = vpop.xlane.xlu1 %1390 }
 0x6bc   :  { %v1395_v37 = vmul.f32 %v1391_v26, %v1382_v38 }
 0x6be   :  { %v1397_v36 = vadd.f32 1e-05, %v1395_v37 }
 0x6c0   :  { %1726 = vrsqrt.f32 %v1397_v36  ;;  %vm1406_vm13 = vcmp.eq.f32.partialorder %v1397_v36, inf  ;;  %v1409_v57 = vand.u32 2147483648, %v1397_v36  ;;  %vm1408_vm14 = vcmp.eq.f32.partialorder %v1397_v36, 0.0 }
 0x6c6   :  { %v1727_v27 = vpop.eup %1726  ;;  %v1394_v42 = vpop.xlane.xlu1 %1393 }
 0x6c7   :  { %v1400_v50 = vmul.f32 %v1727_v27, %v1397_v36  ;;  %v1396_v53 = vmul.f32 %v1394_v42, %v1382_v38 }
 0x6c9   :  { %v1401_v54 = vmul.f32 %v1727_v27, %v1400_v50  ;;  %v1398_v35 = vadd.f32 1e-05, %v1396_v53 }
 0x6cb   :  { %v1402_v19 = vmul.f32 0.5, %v1401_v54  ;;  %1728 = vrsqrt.f32 %v1398_v35  ;;  %vm1418_vm15 = vcmp.eq.f32.partialorder %v1398_v35, inf  ;;  %v1421_v39 = vand.u32 2147483648, %v1398_v35 }
 0x6cc   :  { %vm1420_vm0 = vcmp.eq.f32.partialorder %v1398_v35, 0.0 }
 0x6cd   :  { %v1403_v0 = vsub.f32 1.5, %v1402_v19 }
 0x6cf   :  { %v1404_v9 = vmul.f32 %v1727_v27, %v1403_v0 }
 0x6d1   :  { %v1729_v56 = vpop.eup %1728  ;;  %v1405_v18 = vmul.f32 %v1404_v9, %v1397_v36 }
 0x6d2   :  { %v1412_v58 = vmul.f32 %v1729_v56, %v1398_v35 }
 0x6d3   :  { %v1407_v61 = vsel %vm1406_vm13, %v1397_v36, %v1405_v18 }
 0x6d4   :  { %v1413_v63 = vmul.f32 %v1729_v56, %v1412_v58  ;;  %v1410_v2 = vsel %vm1408_vm14, %v1409_v57, %v1407_v61 }
 0x6d5   :  { %1730 = vrcp.f32 %v1410_v2  ;;  %v1434_v8 = vand.u32 2147483648, %v1410_v2  ;;  %v1432_v44 = vand.u32 2147483647, %v1410_v2  ;;  %vm1428_vm3 = vweird.f32 %v1410_v2 }
 0x6d6   :  { %v1414_v3 = vmul.f32 0.5, %v1413_v63 }
 0x6d7   :  { %v1435_v11 = vor.u32 1.1754944e-38, %v1434_v8  ;;  %vm1433_vm5 = vcmp.eq.f32.partialorder %v1432_v44, 8.507059e+37 }
 0x6d8   :  { %v1415_v21 = vsub.f32 1.5, %v1414_v3 }
 0x6da   :  { %v1416_v29 = vmul.f32 %v1729_v56, %v1415_v21 }
 0x6db   :  { %v1731_v55 = vpop.eup %1730 }
 0x6dc   :  { %v1417_v4 = vmul.f32 %v1416_v29, %v1398_v35  ;;  %v1424_v5 = vmul.f32 %v1731_v55, %v1410_v2  ;;  %vm1429_vm2 = vweird.f32 %v1731_v55 }
 0x6dd   :  { %vm1430_vm4 = vmor %vm1428_vm3, %vm1429_vm2 }
 0x6de   :  { %v1419_v23 = vsel %vm1418_vm15, %v1398_v35, %v1417_v4  ;;  %v1425_v6 = vsub.f32 1.0, %v1424_v5 }
 0x6df   :  { %v1422_v10 = vsel %vm1420_vm0, %v1421_v39, %v1419_v23 }
 0x6e0   :  { %v1426_v62 = vmul.f32 %v1731_v55, %v1425_v6  ;;  %1732 = vrcp.f32 %v1422_v10  ;;  %v1449_v31 = vand.u32 2147483648, %v1422_v10  ;;  %v1447_v17 = vand.u32 2147483647, %v1422_v10 }
 0x6e1   :  { %vm1443_vm7 = vweird.f32 %v1422_v10 }
 0x6e2   :  { %v1427_v22 = vadd.f32 %v1731_v55, %v1426_v62  ;;  %v1450_v16 = vor.u32 1.1754944e-38, %v1449_v31  ;;  %vm1448_vm9 = vcmp.eq.f32.partialorder %v1447_v17, 8.507059e+37 }
 0x6e4   :  { %v1431_v43 = vsel %vm1430_vm4, %v1731_v55, %v1427_v22 }
 0x6e5   :  { %v1436_v7 = vsel %vm1433_vm5, %v1435_v11, %v1431_v43 }
 0x6e6   :  { %v1733_v47 = vpop.eup %1732  ;;  %v1437_v51 = vmul.f32 %v1436_v7, %v2396_v12 }
 0x6e7   :  { %v1439_v1 = vmul.f32 %v1733_v47, %v1422_v10  ;;  %vm1444_vm6 = vweird.f32 %v1733_v47 }
 0x6e8   :  { %v1457_v14 = vmul.f32 %v1665_v52, %v1437_v51  ;;  %vm1445_vm8 = vmor %vm1443_vm7, %vm1444_vm6 }
 0x6e9   :  { %v1440_v30 = vsub.f32 1.0, %v1439_v1 }
 0x6ea   :  { %v1463_v15 = vadd.f32 %v1666_v45, %v1457_v14 }
 0x6eb   :  { %v1441_v34 = vmul.f32 %v1733_v47, %v1440_v30 }
 0x6ec   :  { %1648 = vmatmul.msk.f32.vlgmr.msrb.gmra.mxu1 %vm119_vm1, %v1463_v15 }
 0x6ed   :  { %v1442_v25 = vadd.f32 %v1733_v47, %v1441_v34 }
 0x6ef   :  { %v1446_v38 = vsel %vm1445_vm8, %v1733_v47, %v1442_v25 }
 0x6f0   :  { %v1451_v60 = vsel %vm1448_vm9, %v1450_v16, %v1446_v38 }
 0x6f1   :  { %v1452_v28 = vmul.f32 %v1451_v60, %v2401_v41 }
 0x6f3   :  { %v1458_v12 = vmul.f32 %v1665_v52, %v1452_v28 }
 0x6f5   :  { %v1464_v40 = vadd.f32 %v1666_v45, %v1458_v12 }
 0x6f7   :  { %1649 = vmatmul.msk.f32.vlgmr.msra.gmra.mxu0 %vm119_vm1, %v1464_v40 }
 0x769   :  { %v1493_v24 = vpop.f32.mrf.mxu1 }
 0x76a   :  { %v1494_v59 = vadd.f32 %v1667_v33, %v1493_v24 }
 0x76c   :  { %1496 = vxpose.xlu1.b32.start.end [1/1] (short) (narrow) %v1494_v59, 8 }
 0x774   :  { %v1550_v46 = vpop.f32.mrf.mxu0 }
 0x775   :  { %v1551_v32 = vadd.f32 %v1667_v33, %v1550_v46 }
 0x777   :  { %1553 = vxpose.xlu0.b32.start.end [1/1] (short) (narrow) %v1551_v32, 8 }
 0x810   :  { %v1512_v26 = vpop.trf.xlu1 }
 0x811   :  { %1529 = vst.msk [vmem:[#allocation4] sm:$0xf] %vm1528_vm10, %v1512_v26 }
 0x81b   :  { %v1569_v41 = vpop.trf.xlu0 }
 0x81c   :  { %1586 = vst.msk [vmem:[#allocation4 + $0x4] sm:$0xf] %vm1528_vm10, %v1569_v41 }
 0x81d   :  { %1599 = dma.vmem_to_hbm [thread:$0]  %s1592_s8, 128, %s1594_s2, [#allocation5], %s1764_s15, %s1764_s15, %s1761_s10  }
 0x81e   :  { %1758 = dma.done.wait [#allocation5], 128  }
 0x81f   :  { %1759 = vsyncadd [#allocation5], 4294967168 }
 0x820   :  { %1604 = vsyncpa [#allocation5], 1 }

</bundles_post_ra>
